<compile_context>
chip_gen: v7x
topology: tpu7x:2x2x1
jax: 0.10.0
libtpu: 0.0.40
codegen_flags: <defaults>
</compile_context>

<pallas_src>
import functools

import jax
import jax.numpy as jnp
from jax import lax
from jax.experimental import pallas as pl
from jax.experimental.pallas import tpu as pltpu


# ----------------------------------------------------------------------------
# Fused kernel: one grid step == one batch element
# ----------------------------------------------------------------------------
def adapgl_fused_kernel(x_ref, adj_ref, adjt_ref, w1_ref, w2_ref, w3_ref,
                        be_ref, ve_ref, wgc_ref, wt_ref, bt_ref, wr_ref,
                        br_ref, gamma_ref, beta_ref, o_ref, hpad_ref,
                        *, C, N, F, K, Fc, ksz, pad, eps):
    f32 = jnp.float32
    x3 = x_ref[0]                                     # (C, N, F)

    # ---------------- temporal attention (ASTGCN-style) ----------------
    lhs_cf = jnp.sum(x3 * w1_ref[...][None, :, :], axis=1)           # (C, F)
    lhs = jnp.dot(lhs_cf, w2_ref[...], preferred_element_type=f32)   # (C, N)
    rhs = jnp.sum(x3 * w3_ref[...][None, :, :], axis=2)              # (C, N)
    prod = jnp.dot(lhs, rhs.T, preferred_element_type=f32)           # (C, C)
    e = jnp.dot(ve_ref[...], jax.nn.sigmoid(prod + be_ref[...]),
                preferred_element_type=f32)                          # (C, C)
    e = e - jnp.max(e, axis=-1, keepdims=True)
    p = jnp.exp(e)
    att = p * pl.reciprocal(jnp.sum(p, axis=-1, keepdims=True), approx=True)

    # ---------------- x_tat, stacked as (N, C*F) ------------------------
    # x_tat[c] = sum_t att[c, t] * x[t]; built column-block by column-block so
    # the Chebyshev matmuls below see one wide (N, C*F) right operand.
    cols = []
    for c in range(C):
        acc = att[c:c + 1, 0:1] * x3[0]               # (1,1)*(N,F) -> (N,F)
        for t in range(1, C):
            acc = acc + att[c:c + 1, t:t + 1] * x3[t]
        cols.append(acc)
    xts = jnp.concatenate(cols, axis=-1)              # (N, C*F)

    # ---------------- Chebyshev terms (both branches), stacked ----------
    def cheb_terms(a):
        terms = [xts, jnp.dot(a, xts, preferred_element_type=f32)]
        for _ in range(2, K):
            terms.append(
                2.0 * jnp.dot(a, terms[-1], preferred_element_type=f32)
                - terms[-2])
        return terms

    tp = cheb_terms(adj_ref[...])                     # adj   branch
    tn = cheb_terms(adjt_ref[...])                    # adj^T branch

    # Zero the time halo of the VMEM-resident padded activation slab.
    if pad > 0:
        zeros = jnp.zeros((pad * N, Fc), f32)
        hpad_ref[0:pad * N, :] = zeros
        hpad_ref[(pad + C) * N:(2 * pad + C) * N, :] = zeros

    # Per output time step: one (N, 2*K*F) @ (2*K*F, Fc) matmul against the
    # block-diagonal [wp, wn] weight -> both branches already concatenated.
    wgc = wgc_ref[...]
    for c in range(C):
        g_c = jnp.concatenate(
            [t[:, c * F:(c + 1) * F] for t in tp]
            + [t[:, c * F:(c + 1) * F] for t in tn], axis=-1)    # (N, 2*K*F)
        h_c = jnp.maximum(
            jnp.dot(g_c, wgc, preferred_element_type=f32), 0.0)  # (N, Fc)
        hpad_ref[(pad + c) * N:(pad + c + 1) * N, :] = h_c

    # ---------------- time conv + residual + relu + LayerNorm -----------
    CN = C * N
    acc = jnp.dot(hpad_ref[0:CN, :], wt_ref[0], preferred_element_type=f32)
    for k in range(1, ksz):                           # static unrolled
        acc = acc + jnp.dot(hpad_ref[k * N:k * N + CN, :], wt_ref[k],
                            preferred_element_type=f32)

    x_rows = jnp.concatenate([x3[c] for c in range(C)], axis=0)   # (C*N, F)
    res = jnp.dot(x_rows, wr_ref[...], preferred_element_type=f32)
    # biases added once at the end (no broadcasted accumulator seed)
    y = jnp.maximum(acc + res + bt_ref[...] + br_ref[...], 0.0)   # (C*N, Ft)

    mean = jnp.mean(y, axis=-1, keepdims=True)
    var = jnp.mean(jnp.square(y - mean), axis=-1, keepdims=True)
    yn = (y - mean) * lax.rsqrt(var + eps)
    o_ref[0] = yn * gamma_ref[...] + beta_ref[...]


# ----------------------------------------------------------------------------
# Wrapper
# ----------------------------------------------------------------------------
def adapgl_block_a(x, adj, params, *, kernel_size, K):
    B, C, N, F = x.shape
    half = params['wp'].shape[1]
    Fc = 2 * half                                     # num_cheb_filter
    Ft = params['wt'].shape[2]                        # num_time_filter
    pad = (kernel_size - 1) // 2
    assert K >= 2, "cheb graph conv path requires K >= 2"
    # N % 8 == 0 keeps the k*N row slices of the padded slab sublane-aligned
    # (still correct otherwise, just slower).

    x = x.astype(jnp.float32)
    adj = adj.astype(jnp.float32)
    adj_t = adj.T

    # block-diagonal graph-conv weight: [Gp | Gn] @ [[wp,0],[0,wn]] = [Gp@wp | Gn@wn]
    KF = K * F
    w_gc = jnp.zeros((2 * KF, Fc), jnp.float32)
    w_gc = w_gc.at[:KF, :half].set(params['wp'])
    w_gc = w_gc.at[KF:, half:].set(params['wn'])

    kernel = functools.partial(adapgl_fused_kernel, C=C, N=N, F=F, K=K,
                               Fc=Fc, ksz=kernel_size, pad=pad, eps=1e-5)

    out = pl.pallas_call(
        kernel,
        out_shape=jax.ShapeDtypeStruct((B, C * N, Ft), jnp.float32),
        grid=(B,),
        in_specs=[
            pl.BlockSpec((1, C, N, F), lambda b: (b, 0, 0, 0)),      # x
            pl.BlockSpec((N, N), lambda b: (0, 0)),                  # adj
            pl.BlockSpec((N, N), lambda b: (0, 0)),                  # adj^T
            pl.BlockSpec((N, 1), lambda b: (0, 0)),                  # w1
            pl.BlockSpec((F, N), lambda b: (0, 0)),                  # w2
            pl.BlockSpec((1, F), lambda b: (0, 0)),                  # w3
            pl.BlockSpec((C, C), lambda b: (0, 0)),                  # be
            pl.BlockSpec((C, C), lambda b: (0, 0)),                  # ve
            pl.BlockSpec((2 * KF, Fc), lambda b: (0, 0)),            # [wp,wn]
            pl.BlockSpec((kernel_size, Fc, Ft), lambda b: (0, 0, 0)),  # wt
            pl.BlockSpec((1, Ft), lambda b: (0, 0)),                 # bt
            pl.BlockSpec((F, Ft), lambda b: (0, 0)),                 # wr
            pl.BlockSpec((1, Ft), lambda b: (0, 0)),                 # br
            pl.BlockSpec((1, Ft), lambda b: (0, 0)),                 # gamma
            pl.BlockSpec((1, Ft), lambda b: (0, 0)),                 # beta
        ],
        out_specs=pl.BlockSpec((1, C * N, Ft), lambda b: (b, 0, 0)),
        scratch_shapes=[pltpu.VMEM(((C + 2 * pad) * N, Fc), jnp.float32)],
        compiler_params=pltpu.CompilerParams(
            dimension_semantics=("parallel",),
            vmem_limit_bytes=32 * 1024 * 1024),
    )(x, adj, adj_t, params['w1'].reshape(N, 1), params['w2'],
      params['w3'].reshape(1, F), params['be'], params['ve'], w_gc,
      params['wt'], params['bt'].reshape(1, Ft), params['wr'],
      params['br'].reshape(1, Ft), params['gamma'].reshape(1, Ft),
      params['beta'].reshape(1, Ft))

    return out.reshape(B, C, N, Ft)


# ----------------------------------------------------------------------------
# Pure-JAX reference (mirrors the PyTorch forward) for verification
# ----------------------------------------------------------------------------
def reference(x, adj, params, *, kernel_size, K):
    B, C, N, F = x.shape
    lhs = jnp.einsum('bcnf,n->bcf', x, params['w1']) @ params['w2']
    rhs = jnp.einsum('bcnf,f->bcn', x, params['w3'])
    prod = jnp.einsum('bcn,bdn->bcd', lhs, rhs)
    e = jnp.einsum('ce,bed->bcd', params['ve'],
                   jax.nn.sigmoid(prod + params['be'][None]))
    att = jax.nn.softmax(e, axis=-1)
    x_tat = jnp.einsum('bct,btnf->bcnf', att, x)
    xr = x_tat.reshape(B * C, N, F)

    def cheb(a):
        terms = [xr, jnp.einsum('nm,bmf->bnf', a, xr)]
        for _ in range(2, K):
            terms.append(2 * jnp.einsum('nm,bmf->bnf', a, terms[-1]) - terms[-2])
        return jnp.concatenate(terms, axis=-1)

    hp = cheb(adj) @ params['wp']
    hn = cheb(adj.T) @ params['wn']
    Fc = hp.shape[-1] + hn.shape[-1]
    h = jax.nn.relu(jnp.concatenate([hp, hn], axis=-1)).reshape(B, C, N, Fc)

    pad = (kernel_size - 1) // 2
    hpd = jnp.pad(h, ((0, 0), (pad, pad), (0, 0), (0, 0)))
    tc = params['bt'] + sum(
        jnp.einsum('btnf,fo->btno', hpd[:, k:k + C], params['wt'][k])
        for k in range(kernel_size))
    res = jnp.einsum('btnf,fo->btno', x, params['wr']) + params['br']
    y = jax.nn.relu(tc + res)
    mean = y.mean(-1, keepdims=True)
    var = ((y - mean) ** 2).mean(-1, keepdims=True)
    return (y - mean) / jnp.sqrt(var + 1e-5) * params['gamma'] + params['beta']


if __name__ == "__main__":
    # small shapes consistent with the module
    B, C, N, F = 2, 4, 16, 4          # batch, c_in (time), num_nodes, f_in
    num_cheb_filter, num_time_filter = 8, 8
    kernel_size, K = 3, 3
    half = num_cheb_filter // 2

    key = jax.random.PRNGKey(0)
    ks = jax.random.split(key, 16)

    def rnd(k, shape, scale=0.1):
        return scale * jax.random.normal(k, shape, jnp.float32)

    x = jax.random.normal(ks[0], (B, C, N, F), jnp.float32)
    adj = jax.nn.softmax(jax.random.normal(ks[1], (N, N), jnp.float32), axis=-1)

    params = dict(
        # TemporalAttention
        w1=rnd(ks[2], (N,)), w2=rnd(ks[3], (F, N)), w3=rnd(ks[4], (F,)),
        be=rnd(ks[5], (C, C)), ve=rnd(ks[6], (C, C)),
        # GraphConv (cheb, K=3, no bias / no self / no activation)
        wp=rnd(ks[7], (K * F, half)), wn=rnd(ks[8], (K * F, half)),
        # time_conv: Conv2d(num_cheb_filter -> num_time_filter, (1, ksz))
        wt=rnd(ks[9], (kernel_size, num_cheb_filter, num_time_filter)),
        bt=rnd(ks[10], (num_time_filter,)),
        # residual_conv: Conv2d(f_in -> num_time_filter, (1, 1))
        wr=rnd(ks[11], (F, num_time_filter)), br=rnd(ks[12], (num_time_filter,)),
        # LayerNorm(num_time_filter)
        gamma=1.0 + rnd(ks[13], (num_time_filter,)),
        beta=rnd(ks[14], (num_time_filter,)),
    )

    out = adapgl_block_a(x, adj, params, kernel_size=kernel_size, K=K)
    out = jax.block_until_ready(out)
    assert out.shape == (B, C, N, num_time_filter)

    with jax.default_matmul_precision("float32"):
        ref = jax.block_until_ready(
            reference(x, adj, params, kernel_size=kernel_size, K=K))

    # slightly relaxed tolerance: softmax denominator uses the approximate
    # (EUP) reciprocal inside the kernel.
    if not jnp.allclose(out, ref, rtol=2e-3, atol=2e-3):
        raise AssertionError("Pallas result does not match JAX reference")

    print("KERNEL_OK")
</pallas_src>

<mosaic_0001>
module attributes {stable_mosaic.version = 11 : i64} {
  func.func @adapgl_fused_kernel(%arg0: i32, %arg1: memref<1x4x16x4xf32, #tpu.memory_space<vmem>>, %arg2: memref<16x16xf32, #tpu.memory_space<vmem>>, %arg3: memref<16x16xf32, #tpu.memory_space<vmem>>, %arg4: memref<16x1xf32, #tpu.memory_space<vmem>>, %arg5: memref<4x16xf32, #tpu.memory_space<vmem>>, %arg6: memref<1x4xf32, #tpu.memory_space<vmem>>, %arg7: memref<4x4xf32, #tpu.memory_space<vmem>>, %arg8: memref<4x4xf32, #tpu.memory_space<vmem>>, %arg9: memref<24x8xf32, #tpu.memory_space<vmem>>, %arg10: memref<3x8x8xf32, #tpu.memory_space<vmem>>, %arg11: memref<1x8xf32, #tpu.memory_space<vmem>>, %arg12: memref<4x8xf32, #tpu.memory_space<vmem>>, %arg13: memref<1x8xf32, #tpu.memory_space<vmem>>, %arg14: memref<1x8xf32, #tpu.memory_space<vmem>>, %arg15: memref<1x8xf32, #tpu.memory_space<vmem>>, %arg16: memref<1x64x8xf32, #tpu.memory_space<vmem>>, %arg17: memref<96x8xf32, #tpu.memory_space<vmem>>) attributes {dimension_semantics = [#tpu.dimension_semantics<parallel>], iteration_bounds = array<i64: 2>, scalar_prefetch = 0 : i64, scratch_operands = 1 : i64, tpu.core_type = #tpu.core_type<tc>, window_params = [{transform_indices = @transform_0, window_bounds = array<i64: 1, 4, 16, 4>}, {pipeline_mode = #tpu.pipeline_mode<synchronous>, transform_indices = @transform_1, window_bounds = array<i64: 16, 16>}, {pipeline_mode = #tpu.pipeline_mode<synchronous>, transform_indices = @transform_2, window_bounds = array<i64: 16, 16>}, {pipeline_mode = #tpu.pipeline_mode<synchronous>, transform_indices = @transform_3, window_bounds = array<i64: 16, 1>}, {pipeline_mode = #tpu.pipeline_mode<synchronous>, transform_indices = @transform_4, window_bounds = array<i64: 4, 16>}, {pipeline_mode = #tpu.pipeline_mode<synchronous>, transform_indices = @transform_5, window_bounds = array<i64: 1, 4>}, {pipeline_mode = #tpu.pipeline_mode<synchronous>, transform_indices = @transform_6, window_bounds = array<i64: 4, 4>}, {pipeline_mode = #tpu.pipeline_mode<synchronous>, transform_indices = @transform_7, window_bounds = array<i64: 4, 4>}, {pipeline_mode = #tpu.pipeline_mode<synchronous>, transform_indices = @transform_8, window_bounds = array<i64: 24, 8>}, {pipeline_mode = #tpu.pipeline_mode<synchronous>, transform_indices = @transform_9, window_bounds = array<i64: 3, 8, 8>}, {pipeline_mode = #tpu.pipeline_mode<synchronous>, transform_indices = @transform_10, window_bounds = array<i64: 1, 8>}, {pipeline_mode = #tpu.pipeline_mode<synchronous>, transform_indices = @transform_11, window_bounds = array<i64: 4, 8>}, {pipeline_mode = #tpu.pipeline_mode<synchronous>, transform_indices = @transform_12, window_bounds = array<i64: 1, 8>}, {pipeline_mode = #tpu.pipeline_mode<synchronous>, transform_indices = @transform_13, window_bounds = array<i64: 1, 8>}, {pipeline_mode = #tpu.pipeline_mode<synchronous>, transform_indices = @transform_14, window_bounds = array<i64: 1, 8>}, {transform_indices = @transform_15, window_bounds = array<i64: 1, 64, 8>}]} {
    %c0 = arith.constant 0 : index
    %c0_0 = arith.constant 0 : index
    %c0_1 = arith.constant 0 : index
    %c0_2 = arith.constant 0 : index
    %0 = vector.load %arg1[%c0, %c0_0, %c0_1, %c0_2] : memref<1x4x16x4xf32, #tpu.memory_space<vmem>>, vector<1x4x16x4xf32>
    %1 = vector.shape_cast %0 : vector<1x4x16x4xf32> to vector<4x16x4xf32>
    %c0_3 = arith.constant 0 : index
    %c0_4 = arith.constant 0 : index
    %2 = vector.load %arg4[%c0_3, %c0_4] : memref<16x1xf32, #tpu.memory_space<vmem>>, vector<16x1xf32>
    %3 = vector.shape_cast %2 : vector<16x1xf32> to vector<1x16x1xf32>
    %4 = vector.broadcast %3 : vector<1x16x1xf32> to vector<4x16x4xf32>
    %5 = arith.mulf %1, %4 : vector<4x16x4xf32>
    %cst = arith.constant dense<0.000000e+00> : vector<4x4xf32>
    %6 = vector.multi_reduction <add>, %5, %cst [1] : vector<4x16x4xf32> to vector<4x4xf32>
    %c0_5 = arith.constant 0 : index
    %c0_6 = arith.constant 0 : index
    %7 = vector.load %arg5[%c0_5, %c0_6] : memref<4x16xf32, #tpu.memory_space<vmem>>, vector<4x16xf32>
    %cst_7 = arith.constant dense<0.000000e+00> : vector<4x16xf32>
    %8 = tpu.matmul %6, %7, %cst_7 {dimension_numbers = #tpu.dot_dimension_numbers<[1], [0], [0], [1], [0, 0, 1, 1], [], []>} : vector<4x4xf32>, vector<4x16xf32>, vector<4x16xf32> -> vector<4x16xf32>
    %c0_8 = arith.constant 0 : index
    %c0_9 = arith.constant 0 : index
    %9 = vector.load %arg6[%c0_8, %c0_9] : memref<1x4xf32, #tpu.memory_space<vmem>>, vector<1x4xf32>
    %10 = vector.shape_cast %9 : vector<1x4xf32> to vector<1x1x4xf32>
    %11 = vector.broadcast %10 : vector<1x1x4xf32> to vector<4x16x4xf32>
    %12 = arith.mulf %1, %11 : vector<4x16x4xf32>
    %cst_10 = arith.constant dense<0.000000e+00> : vector<4x16xf32>
    %13 = vector.multi_reduction <add>, %12, %cst_10 [2] : vector<4x16x4xf32> to vector<4x16xf32>
    %14 = tpu.transpose %13, [1, 0] : vector<4x16xf32> -> vector<16x4xf32>
    %cst_11 = arith.constant dense<0.000000e+00> : vector<4x4xf32>
    %15 = tpu.matmul %8, %14, %cst_11 {dimension_numbers = #tpu.dot_dimension_numbers<[1], [0], [0], [1], [0, 0, 1, 1], [], []>} : vector<4x16xf32>, vector<16x4xf32>, vector<4x4xf32> -> vector<4x4xf32>
    %c0_12 = arith.constant 0 : index
    %c0_13 = arith.constant 0 : index
    %16 = vector.load %arg8[%c0_12, %c0_13] : memref<4x4xf32, #tpu.memory_space<vmem>>, vector<4x4xf32>
    %c0_14 = arith.constant 0 : index
    %c0_15 = arith.constant 0 : index
    %17 = vector.load %arg7[%c0_14, %c0_15] : memref<4x4xf32, #tpu.memory_space<vmem>>, vector<4x4xf32>
    %18 = arith.addf %15, %17 : vector<4x4xf32>
    %19 = arith.negf %18 : vector<4x4xf32>
    %20 = math.exp %19 : vector<4x4xf32>
    %cst_16 = arith.constant 1.000000e+00 : f32
    %21 = vector.broadcast %cst_16 : f32 to vector<4x4xf32>
    %22 = arith.addf %21, %20 : vector<4x4xf32>
    %23 = arith.divf %21, %22 : vector<4x4xf32>
    %cst_17 = arith.constant dense<0.000000e+00> : vector<4x4xf32>
    %24 = tpu.matmul %16, %23, %cst_17 {dimension_numbers = #tpu.dot_dimension_numbers<[1], [0], [0], [1], [0, 0, 1, 1], [], []>} : vector<4x4xf32>, vector<4x4xf32>, vector<4x4xf32> -> vector<4x4xf32>
    %cst_18 = arith.constant dense<0xFF800000> : vector<4xf32>
    %25 = vector.multi_reduction <maximumf>, %24, %cst_18 [1] : vector<4x4xf32> to vector<4xf32>
    %26 = vector.shape_cast %25 : vector<4xf32> to vector<4x1xf32>
    %27 = vector.broadcast %26 : vector<4x1xf32> to vector<4x4xf32>
    %28 = arith.subf %24, %27 : vector<4x4xf32>
    %29 = math.exp %28 : vector<4x4xf32>
    %cst_19 = arith.constant dense<0.000000e+00> : vector<4xf32>
    %30 = vector.multi_reduction <add>, %29, %cst_19 [1] : vector<4x4xf32> to vector<4xf32>
    %31 = vector.shape_cast %30 : vector<4xf32> to vector<4x1xf32>
    %32 = tpu.reciprocal %31 {approx = true} : vector<4x1xf32> -> vector<4x1xf32>
    %33 = vector.broadcast %32 : vector<4x1xf32> to vector<4x4xf32>
    %34 = arith.mulf %29, %33 : vector<4x4xf32>
    %35 = vector.extract_strided_slice %34 {offsets = [0, 0], sizes = [1, 1], strides = [1, 1]} : vector<4x4xf32> to vector<1x1xf32>
    %36 = vector.extract_strided_slice %1 {offsets = [0, 0, 0], sizes = [1, 16, 4], strides = [1, 1, 1]} : vector<4x16x4xf32> to vector<1x16x4xf32>
    %37 = vector.shape_cast %36 : vector<1x16x4xf32> to vector<16x4xf32>
    %38 = vector.broadcast %35 : vector<1x1xf32> to vector<16x4xf32>
    %39 = arith.mulf %38, %37 : vector<16x4xf32>
    %40 = vector.extract_strided_slice %34 {offsets = [0, 1], sizes = [1, 1], strides = [1, 1]} : vector<4x4xf32> to vector<1x1xf32>
    %41 = vector.extract_strided_slice %1 {offsets = [1, 0, 0], sizes = [1, 16, 4], strides = [1, 1, 1]} : vector<4x16x4xf32> to vector<1x16x4xf32>
    %42 = vector.shape_cast %41 : vector<1x16x4xf32> to vector<16x4xf32>
    %43 = vector.broadcast %40 : vector<1x1xf32> to vector<16x4xf32>
    %44 = arith.mulf %43, %42 : vector<16x4xf32>
    %45 = arith.addf %39, %44 : vector<16x4xf32>
    %46 = vector.extract_strided_slice %34 {offsets = [0, 2], sizes = [1, 1], strides = [1, 1]} : vector<4x4xf32> to vector<1x1xf32>
    %47 = vector.extract_strided_slice %1 {offsets = [2, 0, 0], sizes = [1, 16, 4], strides = [1, 1, 1]} : vector<4x16x4xf32> to vector<1x16x4xf32>
    %48 = vector.shape_cast %47 : vector<1x16x4xf32> to vector<16x4xf32>
    %49 = vector.broadcast %46 : vector<1x1xf32> to vector<16x4xf32>
    %50 = arith.mulf %49, %48 : vector<16x4xf32>
    %51 = arith.addf %45, %50 : vector<16x4xf32>
    %52 = vector.extract_strided_slice %34 {offsets = [0, 3], sizes = [1, 1], strides = [1, 1]} : vector<4x4xf32> to vector<1x1xf32>
    %53 = vector.extract_strided_slice %1 {offsets = [3, 0, 0], sizes = [1, 16, 4], strides = [1, 1, 1]} : vector<4x16x4xf32> to vector<1x16x4xf32>
    %54 = vector.shape_cast %53 : vector<1x16x4xf32> to vector<16x4xf32>
    %55 = vector.broadcast %52 : vector<1x1xf32> to vector<16x4xf32>
    %56 = arith.mulf %55, %54 : vector<16x4xf32>
    %57 = arith.addf %51, %56 : vector<16x4xf32>
    %58 = vector.extract_strided_slice %34 {offsets = [1, 0], sizes = [1, 1], strides = [1, 1]} : vector<4x4xf32> to vector<1x1xf32>
    %59 = vector.extract_strided_slice %1 {offsets = [0, 0, 0], sizes = [1, 16, 4], strides = [1, 1, 1]} : vector<4x16x4xf32> to vector<1x16x4xf32>
    %60 = vector.shape_cast %59 : vector<1x16x4xf32> to vector<16x4xf32>
    %61 = vector.broadcast %58 : vector<1x1xf32> to vector<16x4xf32>
    %62 = arith.mulf %61, %60 : vector<16x4xf32>
    %63 = vector.extract_strided_slice %34 {offsets = [1, 1], sizes = [1, 1], strides = [1, 1]} : vector<4x4xf32> to vector<1x1xf32>
    %64 = vector.extract_strided_slice %1 {offsets = [1, 0, 0], sizes = [1, 16, 4], strides = [1, 1, 1]} : vector<4x16x4xf32> to vector<1x16x4xf32>
    %65 = vector.shape_cast %64 : vector<1x16x4xf32> to vector<16x4xf32>
    %66 = vector.broadcast %63 : vector<1x1xf32> to vector<16x4xf32>
    %67 = arith.mulf %66, %65 : vector<16x4xf32>
    %68 = arith.addf %62, %67 : vector<16x4xf32>
    %69 = vector.extract_strided_slice %34 {offsets = [1, 2], sizes = [1, 1], strides = [1, 1]} : vector<4x4xf32> to vector<1x1xf32>
    %70 = vector.extract_strided_slice %1 {offsets = [2, 0, 0], sizes = [1, 16, 4], strides = [1, 1, 1]} : vector<4x16x4xf32> to vector<1x16x4xf32>
    %71 = vector.shape_cast %70 : vector<1x16x4xf32> to vector<16x4xf32>
    %72 = vector.broadcast %69 : vector<1x1xf32> to vector<16x4xf32>
    %73 = arith.mulf %72, %71 : vector<16x4xf32>
    %74 = arith.addf %68, %73 : vector<16x4xf32>
    %75 = vector.extract_strided_slice %34 {offsets = [1, 3], sizes = [1, 1], strides = [1, 1]} : vector<4x4xf32> to vector<1x1xf32>
    %76 = vector.extract_strided_slice %1 {offsets = [3, 0, 0], sizes = [1, 16, 4], strides = [1, 1, 1]} : vector<4x16x4xf32> to vector<1x16x4xf32>
    %77 = vector.shape_cast %76 : vector<1x16x4xf32> to vector<16x4xf32>
    %78 = vector.broadcast %75 : vector<1x1xf32> to vector<16x4xf32>
    %79 = arith.mulf %78, %77 : vector<16x4xf32>
    %80 = arith.addf %74, %79 : vector<16x4xf32>
    %81 = vector.extract_strided_slice %34 {offsets = [2, 0], sizes = [1, 1], strides = [1, 1]} : vector<4x4xf32> to vector<1x1xf32>
    %82 = vector.extract_strided_slice %1 {offsets = [0, 0, 0], sizes = [1, 16, 4], strides = [1, 1, 1]} : vector<4x16x4xf32> to vector<1x16x4xf32>
    %83 = vector.shape_cast %82 : vector<1x16x4xf32> to vector<16x4xf32>
    %84 = vector.broadcast %81 : vector<1x1xf32> to vector<16x4xf32>
    %85 = arith.mulf %84, %83 : vector<16x4xf32>
    %86 = vector.extract_strided_slice %34 {offsets = [2, 1], sizes = [1, 1], strides = [1, 1]} : vector<4x4xf32> to vector<1x1xf32>
    %87 = vector.extract_strided_slice %1 {offsets = [1, 0, 0], sizes = [1, 16, 4], strides = [1, 1, 1]} : vector<4x16x4xf32> to vector<1x16x4xf32>
    %88 = vector.shape_cast %87 : vector<1x16x4xf32> to vector<16x4xf32>
    %89 = vector.broadcast %86 : vector<1x1xf32> to vector<16x4xf32>
    %90 = arith.mulf %89, %88 : vector<16x4xf32>
    %91 = arith.addf %85, %90 : vector<16x4xf32>
    %92 = vector.extract_strided_slice %34 {offsets = [2, 2], sizes = [1, 1], strides = [1, 1]} : vector<4x4xf32> to vector<1x1xf32>
    %93 = vector.extract_strided_slice %1 {offsets = [2, 0, 0], sizes = [1, 16, 4], strides = [1, 1, 1]} : vector<4x16x4xf32> to vector<1x16x4xf32>
    %94 = vector.shape_cast %93 : vector<1x16x4xf32> to vector<16x4xf32>
    %95 = vector.broadcast %92 : vector<1x1xf32> to vector<16x4xf32>
    %96 = arith.mulf %95, %94 : vector<16x4xf32>
    %97 = arith.addf %91, %96 : vector<16x4xf32>
    %98 = vector.extract_strided_slice %34 {offsets = [2, 3], sizes = [1, 1], strides = [1, 1]} : vector<4x4xf32> to vector<1x1xf32>
    %99 = vector.extract_strided_slice %1 {offsets = [3, 0, 0], sizes = [1, 16, 4], strides = [1, 1, 1]} : vector<4x16x4xf32> to vector<1x16x4xf32>
    %100 = vector.shape_cast %99 : vector<1x16x4xf32> to vector<16x4xf32>
    %101 = vector.broadcast %98 : vector<1x1xf32> to vector<16x4xf32>
    %102 = arith.mulf %101, %100 : vector<16x4xf32>
    %103 = arith.addf %97, %102 : vector<16x4xf32>
    %104 = vector.extract_strided_slice %34 {offsets = [3, 0], sizes = [1, 1], strides = [1, 1]} : vector<4x4xf32> to vector<1x1xf32>
    %105 = vector.extract_strided_slice %1 {offsets = [0, 0, 0], sizes = [1, 16, 4], strides = [1, 1, 1]} : vector<4x16x4xf32> to vector<1x16x4xf32>
    %106 = vector.shape_cast %105 : vector<1x16x4xf32> to vector<16x4xf32>
    %107 = vector.broadcast %104 : vector<1x1xf32> to vector<16x4xf32>
    %108 = arith.mulf %107, %106 : vector<16x4xf32>
    %109 = vector.extract_strided_slice %34 {offsets = [3, 1], sizes = [1, 1], strides = [1, 1]} : vector<4x4xf32> to vector<1x1xf32>
    %110 = vector.extract_strided_slice %1 {offsets = [1, 0, 0], sizes = [1, 16, 4], strides = [1, 1, 1]} : vector<4x16x4xf32> to vector<1x16x4xf32>
    %111 = vector.shape_cast %110 : vector<1x16x4xf32> to vector<16x4xf32>
    %112 = vector.broadcast %109 : vector<1x1xf32> to vector<16x4xf32>
    %113 = arith.mulf %112, %111 : vector<16x4xf32>
    %114 = arith.addf %108, %113 : vector<16x4xf32>
    %115 = vector.extract_strided_slice %34 {offsets = [3, 2], sizes = [1, 1], strides = [1, 1]} : vector<4x4xf32> to vector<1x1xf32>
    %116 = vector.extract_strided_slice %1 {offsets = [2, 0, 0], sizes = [1, 16, 4], strides = [1, 1, 1]} : vector<4x16x4xf32> to vector<1x16x4xf32>
    %117 = vector.shape_cast %116 : vector<1x16x4xf32> to vector<16x4xf32>
    %118 = vector.broadcast %115 : vector<1x1xf32> to vector<16x4xf32>
    %119 = arith.mulf %118, %117 : vector<16x4xf32>
    %120 = arith.addf %114, %119 : vector<16x4xf32>
    %121 = vector.extract_strided_slice %34 {offsets = [3, 3], sizes = [1, 1], strides = [1, 1]} : vector<4x4xf32> to vector<1x1xf32>
    %122 = vector.extract_strided_slice %1 {offsets = [3, 0, 0], sizes = [1, 16, 4], strides = [1, 1, 1]} : vector<4x16x4xf32> to vector<1x16x4xf32>
    %123 = vector.shape_cast %122 : vector<1x16x4xf32> to vector<16x4xf32>
    %124 = vector.broadcast %121 : vector<1x1xf32> to vector<16x4xf32>
    %125 = arith.mulf %124, %123 : vector<16x4xf32>
    %126 = arith.addf %120, %125 : vector<16x4xf32>
    %127 = tpu.concatenate %57, %80, %103, %126 in 1 : vector<16x4xf32>, vector<16x4xf32>, vector<16x4xf32>, vector<16x4xf32> -> vector<16x16xf32>
    %c0_20 = arith.constant 0 : index
    %c0_21 = arith.constant 0 : index
    %128 = vector.load %arg2[%c0_20, %c0_21] : memref<16x16xf32, #tpu.memory_space<vmem>>, vector<16x16xf32>
    %cst_22 = arith.constant dense<0.000000e+00> : vector<16x16xf32>
    %129 = tpu.matmul %128, %127, %cst_22 {dimension_numbers = #tpu.dot_dimension_numbers<[1], [0], [0], [1], [0, 0, 1, 1], [], []>} : vector<16x16xf32>, vector<16x16xf32>, vector<16x16xf32> -> vector<16x16xf32>
    %cst_23 = arith.constant dense<0.000000e+00> : vector<16x16xf32>
    %130 = tpu.matmul %128, %129, %cst_23 {dimension_numbers = #tpu.dot_dimension_numbers<[1], [0], [0], [1], [0, 0, 1, 1], [], []>} : vector<16x16xf32>, vector<16x16xf32>, vector<16x16xf32> -> vector<16x16xf32>
    %cst_24 = arith.constant 2.000000e+00 : f32
    %131 = vector.broadcast %cst_24 : f32 to vector<16x16xf32>
    %132 = arith.mulf %131, %130 : vector<16x16xf32>
    %133 = arith.subf %132, %127 : vector<16x16xf32>
    %c0_25 = arith.constant 0 : index
    %c0_26 = arith.constant 0 : index
    %134 = vector.load %arg3[%c0_25, %c0_26] : memref<16x16xf32, #tpu.memory_space<vmem>>, vector<16x16xf32>
    %cst_27 = arith.constant dense<0.000000e+00> : vector<16x16xf32>
    %135 = tpu.matmul %134, %127, %cst_27 {dimension_numbers = #tpu.dot_dimension_numbers<[1], [0], [0], [1], [0, 0, 1, 1], [], []>} : vector<16x16xf32>, vector<16x16xf32>, vector<16x16xf32> -> vector<16x16xf32>
    %cst_28 = arith.constant dense<0.000000e+00> : vector<16x16xf32>
    %136 = tpu.matmul %134, %135, %cst_28 {dimension_numbers = #tpu.dot_dimension_numbers<[1], [0], [0], [1], [0, 0, 1, 1], [], []>} : vector<16x16xf32>, vector<16x16xf32>, vector<16x16xf32> -> vector<16x16xf32>
    %cst_29 = arith.constant 2.000000e+00 : f32
    %137 = vector.broadcast %cst_29 : f32 to vector<16x16xf32>
    %138 = arith.mulf %137, %136 : vector<16x16xf32>
    %139 = arith.subf %138, %127 : vector<16x16xf32>
    %cst_30 = arith.constant 0.000000e+00 : f32
    %140 = vector.broadcast %cst_30 : f32 to vector<16x8xf32>
    %c0_31 = arith.constant 0 : index
    %c0_32 = arith.constant 0 : index
    %141 = vector.load %arg17[%c0_31, %c0_32] : memref<96x8xf32, #tpu.memory_space<vmem>>, vector<16x8xf32>
    tpu.vector_store %arg17[%c0_31, %c0_32], %140 {strides = array<i32>} : memref<96x8xf32, #tpu.memory_space<vmem>>, vector<16x8xf32>,
    %c80 = arith.constant 80 : index
    %c0_33 = arith.constant 0 : index
    %142 = vector.load %arg17[%c80, %c0_33] : memref<96x8xf32, #tpu.memory_space<vmem>>, vector<16x8xf32>
    tpu.vector_store %arg17[%c80, %c0_33], %140 {strides = array<i32>} : memref<96x8xf32, #tpu.memory_space<vmem>>, vector<16x8xf32>,
    %c0_34 = arith.constant 0 : index
    %c0_35 = arith.constant 0 : index
    %143 = vector.load %arg9[%c0_34, %c0_35] : memref<24x8xf32, #tpu.memory_space<vmem>>, vector<24x8xf32>
    %144 = vector.extract_strided_slice %127 {offsets = [0, 0], sizes = [16, 4], strides = [1, 1]} : vector<16x16xf32> to vector<16x4xf32>
    %145 = vector.extract_strided_slice %129 {offsets = [0, 0], sizes = [16, 4], strides = [1, 1]} : vector<16x16xf32> to vector<16x4xf32>
    %146 = vector.extract_strided_slice %133 {offsets = [0, 0], sizes = [16, 4], strides = [1, 1]} : vector<16x16xf32> to vector<16x4xf32>
    %147 = vector.extract_strided_slice %127 {offsets = [0, 0], sizes = [16, 4], strides = [1, 1]} : vector<16x16xf32> to vector<16x4xf32>
    %148 = vector.extract_strided_slice %135 {offsets = [0, 0], sizes = [16, 4], strides = [1, 1]} : vector<16x16xf32> to vector<16x4xf32>
    %149 = vector.extract_strided_slice %139 {offsets = [0, 0], sizes = [16, 4], strides = [1, 1]} : vector<16x16xf32> to vector<16x4xf32>
    %150 = tpu.concatenate %144, %145, %146, %147, %148, %149 in 1 : vector<16x4xf32>, vector<16x4xf32>, vector<16x4xf32>, vector<16x4xf32>, vector<16x4xf32>, vector<16x4xf32> -> vector<16x24xf32>
    %cst_36 = arith.constant dense<0.000000e+00> : vector<16x8xf32>
    %151 = tpu.matmul %150, %143, %cst_36 {dimension_numbers = #tpu.dot_dimension_numbers<[1], [0], [0], [1], [0, 0, 1, 1], [], []>} : vector<16x24xf32>, vector<24x8xf32>, vector<16x8xf32> -> vector<16x8xf32>
    %cst_37 = arith.constant 0.000000e+00 : f32
    %152 = vector.broadcast %cst_37 : f32 to vector<16x8xf32>
    %153 = arith.maximumf %151, %152 : vector<16x8xf32>
    %c16 = arith.constant 16 : index
    %c0_38 = arith.constant 0 : index
    %154 = vector.load %arg17[%c16, %c0_38] : memref<96x8xf32, #tpu.memory_space<vmem>>, vector<16x8xf32>
    tpu.vector_store %arg17[%c16, %c0_38], %153 {strides = array<i32>} : memref<96x8xf32, #tpu.memory_space<vmem>>, vector<16x8xf32>,
    %155 = vector.extract_strided_slice %127 {offsets = [0, 4], sizes = [16, 4], strides = [1, 1]} : vector<16x16xf32> to vector<16x4xf32>
    %156 = vector.extract_strided_slice %129 {offsets = [0, 4], sizes = [16, 4], strides = [1, 1]} : vector<16x16xf32> to vector<16x4xf32>
    %157 = vector.extract_strided_slice %133 {offsets = [0, 4], sizes = [16, 4], strides = [1, 1]} : vector<16x16xf32> to vector<16x4xf32>
    %158 = vector.extract_strided_slice %127 {offsets = [0, 4], sizes = [16, 4], strides = [1, 1]} : vector<16x16xf32> to vector<16x4xf32>
    %159 = vector.extract_strided_slice %135 {offsets = [0, 4], sizes = [16, 4], strides = [1, 1]} : vector<16x16xf32> to vector<16x4xf32>
    %160 = vector.extract_strided_slice %139 {offsets = [0, 4], sizes = [16, 4], strides = [1, 1]} : vector<16x16xf32> to vector<16x4xf32>
    %161 = tpu.concatenate %155, %156, %157, %158, %159, %160 in 1 : vector<16x4xf32>, vector<16x4xf32>, vector<16x4xf32>, vector<16x4xf32>, vector<16x4xf32>, vector<16x4xf32> -> vector<16x24xf32>
    %cst_39 = arith.constant dense<0.000000e+00> : vector<16x8xf32>
    %162 = tpu.matmul %161, %143, %cst_39 {dimension_numbers = #tpu.dot_dimension_numbers<[1], [0], [0], [1], [0, 0, 1, 1], [], []>} : vector<16x24xf32>, vector<24x8xf32>, vector<16x8xf32> -> vector<16x8xf32>
    %cst_40 = arith.constant 0.000000e+00 : f32
    %163 = vector.broadcast %cst_40 : f32 to vector<16x8xf32>
    %164 = arith.maximumf %162, %163 : vector<16x8xf32>
    %c32 = arith.constant 32 : index
    %c0_41 = arith.constant 0 : index
    %165 = vector.load %arg17[%c32, %c0_41] : memref<96x8xf32, #tpu.memory_space<vmem>>, vector<16x8xf32>
    tpu.vector_store %arg17[%c32, %c0_41], %164 {strides = array<i32>} : memref<96x8xf32, #tpu.memory_space<vmem>>, vector<16x8xf32>,
    %166 = vector.extract_strided_slice %127 {offsets = [0, 8], sizes = [16, 4], strides = [1, 1]} : vector<16x16xf32> to vector<16x4xf32>
    %167 = vector.extract_strided_slice %129 {offsets = [0, 8], sizes = [16, 4], strides = [1, 1]} : vector<16x16xf32> to vector<16x4xf32>
    %168 = vector.extract_strided_slice %133 {offsets = [0, 8], sizes = [16, 4], strides = [1, 1]} : vector<16x16xf32> to vector<16x4xf32>
    %169 = vector.extract_strided_slice %127 {offsets = [0, 8], sizes = [16, 4], strides = [1, 1]} : vector<16x16xf32> to vector<16x4xf32>
    %170 = vector.extract_strided_slice %135 {offsets = [0, 8], sizes = [16, 4], strides = [1, 1]} : vector<16x16xf32> to vector<16x4xf32>
    %171 = vector.extract_strided_slice %139 {offsets = [0, 8], sizes = [16, 4], strides = [1, 1]} : vector<16x16xf32> to vector<16x4xf32>
    %172 = tpu.concatenate %166, %167, %168, %169, %170, %171 in 1 : vector<16x4xf32>, vector<16x4xf32>, vector<16x4xf32>, vector<16x4xf32>, vector<16x4xf32>, vector<16x4xf32> -> vector<16x24xf32>
    %cst_42 = arith.constant dense<0.000000e+00> : vector<16x8xf32>
    %173 = tpu.matmul %172, %143, %cst_42 {dimension_numbers = #tpu.dot_dimension_numbers<[1], [0], [0], [1], [0, 0, 1, 1], [], []>} : vector<16x24xf32>, vector<24x8xf32>, vector<16x8xf32> -> vector<16x8xf32>
    %cst_43 = arith.constant 0.000000e+00 : f32
    %174 = vector.broadcast %cst_43 : f32 to vector<16x8xf32>
    %175 = arith.maximumf %173, %174 : vector<16x8xf32>
    %c48 = arith.constant 48 : index
    %c0_44 = arith.constant 0 : index
    %176 = vector.load %arg17[%c48, %c0_44] : memref<96x8xf32, #tpu.memory_space<vmem>>, vector<16x8xf32>
    tpu.vector_store %arg17[%c48, %c0_44], %175 {strides = array<i32>} : memref<96x8xf32, #tpu.memory_space<vmem>>, vector<16x8xf32>,
    %177 = vector.extract_strided_slice %127 {offsets = [0, 12], sizes = [16, 4], strides = [1, 1]} : vector<16x16xf32> to vector<16x4xf32>
    %178 = vector.extract_strided_slice %129 {offsets = [0, 12], sizes = [16, 4], strides = [1, 1]} : vector<16x16xf32> to vector<16x4xf32>
    %179 = vector.extract_strided_slice %133 {offsets = [0, 12], sizes = [16, 4], strides = [1, 1]} : vector<16x16xf32> to vector<16x4xf32>
    %180 = vector.extract_strided_slice %127 {offsets = [0, 12], sizes = [16, 4], strides = [1, 1]} : vector<16x16xf32> to vector<16x4xf32>
    %181 = vector.extract_strided_slice %135 {offsets = [0, 12], sizes = [16, 4], strides = [1, 1]} : vector<16x16xf32> to vector<16x4xf32>
    %182 = vector.extract_strided_slice %139 {offsets = [0, 12], sizes = [16, 4], strides = [1, 1]} : vector<16x16xf32> to vector<16x4xf32>
    %183 = tpu.concatenate %177, %178, %179, %180, %181, %182 in 1 : vector<16x4xf32>, vector<16x4xf32>, vector<16x4xf32>, vector<16x4xf32>, vector<16x4xf32>, vector<16x4xf32> -> vector<16x24xf32>
    %cst_45 = arith.constant dense<0.000000e+00> : vector<16x8xf32>
    %184 = tpu.matmul %183, %143, %cst_45 {dimension_numbers = #tpu.dot_dimension_numbers<[1], [0], [0], [1], [0, 0, 1, 1], [], []>} : vector<16x24xf32>, vector<24x8xf32>, vector<16x8xf32> -> vector<16x8xf32>
    %cst_46 = arith.constant 0.000000e+00 : f32
    %185 = vector.broadcast %cst_46 : f32 to vector<16x8xf32>
    %186 = arith.maximumf %184, %185 : vector<16x8xf32>
    %c64 = arith.constant 64 : index
    %c0_47 = arith.constant 0 : index
    %187 = vector.load %arg17[%c64, %c0_47] : memref<96x8xf32, #tpu.memory_space<vmem>>, vector<16x8xf32>
    tpu.vector_store %arg17[%c64, %c0_47], %186 {strides = array<i32>} : memref<96x8xf32, #tpu.memory_space<vmem>>, vector<16x8xf32>,
    %c0_48 = arith.constant 0 : index
    %c0_49 = arith.constant 0 : index
    %188 = vector.load %arg17[%c0_48, %c0_49] : memref<96x8xf32, #tpu.memory_space<vmem>>, vector<64x8xf32>
    %c0_50 = arith.constant 0 : index
    %c0_51 = arith.constant 0 : index
    %c0_52 = arith.constant 0 : index
    %189 = vector.load %arg10[%c0_50, %c0_51, %c0_52] : memref<3x8x8xf32, #tpu.memory_space<vmem>>, vector<1x8x8xf32>
    %190 = vector.shape_cast %189 : vector<1x8x8xf32> to vector<8x8xf32>
    %cst_53 = arith.constant dense<0.000000e+00> : vector<64x8xf32>
    %191 = tpu.matmul %188, %190, %cst_53 {dimension_numbers = #tpu.dot_dimension_numbers<[1], [0], [0], [1], [0, 0, 1, 1], [], []>} : vector<64x8xf32>, vector<8x8xf32>, vector<64x8xf32> -> vector<64x8xf32>
    %c16_54 = arith.constant 16 : index
    %c0_55 = arith.constant 0 : index
    %192 = vector.load %arg17[%c16_54, %c0_55] : memref<96x8xf32, #tpu.memory_space<vmem>>, vector<64x8xf32>
    %c1 = arith.constant 1 : index
    %c0_56 = arith.constant 0 : index
    %c0_57 = arith.constant 0 : index
    %193 = vector.load %arg10[%c1, %c0_56, %c0_57] : memref<3x8x8xf32, #tpu.memory_space<vmem>>, vector<1x8x8xf32>
    %194 = vector.shape_cast %193 : vector<1x8x8xf32> to vector<8x8xf32>
    %cst_58 = arith.constant dense<0.000000e+00> : vector<64x8xf32>
    %195 = tpu.matmul %192, %194, %cst_58 {dimension_numbers = #tpu.dot_dimension_numbers<[1], [0], [0], [1], [0, 0, 1, 1], [], []>} : vector<64x8xf32>, vector<8x8xf32>, vector<64x8xf32> -> vector<64x8xf32>
    %196 = arith.addf %191, %195 : vector<64x8xf32>
    %c32_59 = arith.constant 32 : index
    %c0_60 = arith.constant 0 : index
    %197 = vector.load %arg17[%c32_59, %c0_60] : memref<96x8xf32, #tpu.memory_space<vmem>>, vector<64x8xf32>
    %c2 = arith.constant 2 : index
    %c0_61 = arith.constant 0 : index
    %c0_62 = arith.constant 0 : index
    %198 = vector.load %arg10[%c2, %c0_61, %c0_62] : memref<3x8x8xf32, #tpu.memory_space<vmem>>, vector<1x8x8xf32>
    %199 = vector.shape_cast %198 : vector<1x8x8xf32> to vector<8x8xf32>
    %cst_63 = arith.constant dense<0.000000e+00> : vector<64x8xf32>
    %200 = tpu.matmul %197, %199, %cst_63 {dimension_numbers = #tpu.dot_dimension_numbers<[1], [0], [0], [1], [0, 0, 1, 1], [], []>} : vector<64x8xf32>, vector<8x8xf32>, vector<64x8xf32> -> vector<64x8xf32>
    %201 = arith.addf %196, %200 : vector<64x8xf32>
    %202 = vector.extract_strided_slice %1 {offsets = [0, 0, 0], sizes = [1, 16, 4], strides = [1, 1, 1]} : vector<4x16x4xf32> to vector<1x16x4xf32>
    %203 = vector.shape_cast %202 : vector<1x16x4xf32> to vector<16x4xf32>
    %204 = vector.extract_strided_slice %1 {offsets = [1, 0, 0], sizes = [1, 16, 4], strides = [1, 1, 1]} : vector<4x16x4xf32> to vector<1x16x4xf32>
    %205 = vector.shape_cast %204 : vector<1x16x4xf32> to vector<16x4xf32>
    %206 = vector.extract_strided_slice %1 {offsets = [2, 0, 0], sizes = [1, 16, 4], strides = [1, 1, 1]} : vector<4x16x4xf32> to vector<1x16x4xf32>
    %207 = vector.shape_cast %206 : vector<1x16x4xf32> to vector<16x4xf32>
    %208 = vector.extract_strided_slice %1 {offsets = [3, 0, 0], sizes = [1, 16, 4], strides = [1, 1, 1]} : vector<4x16x4xf32> to vector<1x16x4xf32>
    %209 = vector.shape_cast %208 : vector<1x16x4xf32> to vector<16x4xf32>
    %210 = tpu.concatenate %203, %205, %207, %209 in 0 : vector<16x4xf32>, vector<16x4xf32>, vector<16x4xf32>, vector<16x4xf32> -> vector<64x4xf32>
    %c0_64 = arith.constant 0 : index
    %c0_65 = arith.constant 0 : index
    %211 = vector.load %arg12[%c0_64, %c0_65] : memref<4x8xf32, #tpu.memory_space<vmem>>, vector<4x8xf32>
    %cst_66 = arith.constant dense<0.000000e+00> : vector<64x8xf32>
    %212 = tpu.matmul %210, %211, %cst_66 {dimension_numbers = #tpu.dot_dimension_numbers<[1], [0], [0], [1], [0, 0, 1, 1], [], []>} : vector<64x4xf32>, vector<4x8xf32>, vector<64x8xf32> -> vector<64x8xf32>
    %213 = arith.addf %201, %212 : vector<64x8xf32>
    %c0_67 = arith.constant 0 : index
    %c0_68 = arith.constant 0 : index
    %214 = vector.load %arg11[%c0_67, %c0_68] : memref<1x8xf32, #tpu.memory_space<vmem>>, vector<1x8xf32>
    %215 = vector.broadcast %214 : vector<1x8xf32> to vector<64x8xf32>
    %216 = arith.addf %213, %215 : vector<64x8xf32>
    %c0_69 = arith.constant 0 : index
    %c0_70 = arith.constant 0 : index
    %217 = vector.load %arg13[%c0_69, %c0_70] : memref<1x8xf32, #tpu.memory_space<vmem>>, vector<1x8xf32>
    %218 = vector.broadcast %217 : vector<1x8xf32> to vector<64x8xf32>
    %219 = arith.addf %216, %218 : vector<64x8xf32>
    %cst_71 = arith.constant 0.000000e+00 : f32
    %220 = vector.broadcast %cst_71 : f32 to vector<64x8xf32>
    %221 = arith.maximumf %219, %220 : vector<64x8xf32>
    %cst_72 = arith.constant dense<0.000000e+00> : vector<64xf32>
    %222 = vector.multi_reduction <add>, %221, %cst_72 [1] : vector<64x8xf32> to vector<64xf32>
    %223 = vector.shape_cast %222 : vector<64xf32> to vector<64x1xf32>
    %cst_73 = arith.constant 8.000000e+00 : f32
    %224 = vector.broadcast %cst_73 : f32 to vector<64x1xf32>
    %225 = arith.divf %223, %224 : vector<64x1xf32>
    %226 = vector.broadcast %225 : vector<64x1xf32> to vector<64x8xf32>
    %227 = arith.subf %221, %226 : vector<64x8xf32>
    %228 = arith.mulf %227, %227 : vector<64x8xf32>
    %cst_74 = arith.constant dense<0.000000e+00> : vector<64xf32>
    %229 = vector.multi_reduction <add>, %228, %cst_74 [1] : vector<64x8xf32> to vector<64xf32>
    %230 = vector.shape_cast %229 : vector<64xf32> to vector<64x1xf32>
    %cst_75 = arith.constant 8.000000e+00 : f32
    %231 = vector.broadcast %cst_75 : f32 to vector<64x1xf32>
    %232 = arith.divf %230, %231 : vector<64x1xf32>
    %233 = vector.broadcast %225 : vector<64x1xf32> to vector<64x8xf32>
    %234 = arith.subf %221, %233 : vector<64x8xf32>
    %cst_76 = arith.constant 9.99999974E-6 : f32
    %235 = vector.broadcast %cst_76 : f32 to vector<64x1xf32>
    %236 = arith.addf %232, %235 : vector<64x1xf32>
    %237 = math.rsqrt %236 : vector<64x1xf32>
    %238 = vector.broadcast %237 : vector<64x1xf32> to vector<64x8xf32>
    %239 = arith.mulf %234, %238 : vector<64x8xf32>
    %c0_77 = arith.constant 0 : index
    %c0_78 = arith.constant 0 : index
    %240 = vector.load %arg14[%c0_77, %c0_78] : memref<1x8xf32, #tpu.memory_space<vmem>>, vector<1x8xf32>
    %241 = vector.broadcast %240 : vector<1x8xf32> to vector<64x8xf32>
    %242 = arith.mulf %239, %241 : vector<64x8xf32>
    %c0_79 = arith.constant 0 : index
    %c0_80 = arith.constant 0 : index
    %243 = vector.load %arg15[%c0_79, %c0_80] : memref<1x8xf32, #tpu.memory_space<vmem>>, vector<1x8xf32>
    %244 = vector.broadcast %243 : vector<1x8xf32> to vector<64x8xf32>
    %245 = arith.addf %242, %244 : vector<64x8xf32>
    %c0_81 = arith.constant 0 : index
    %c0_82 = arith.constant 0 : index
    %c0_83 = arith.constant 0 : index
    %246 = vector.load %arg16[%c0_81, %c0_82, %c0_83] : memref<1x64x8xf32, #tpu.memory_space<vmem>>, vector<1x64x8xf32>
    %247 = vector.shape_cast %246 : vector<1x64x8xf32> to vector<64x8xf32>
    %248 = vector.shape_cast %245 : vector<64x8xf32> to vector<1x64x8xf32>
    tpu.vector_store %arg16[%c0_81, %c0_82, %c0_83], %248 {strides = array<i32>} : memref<1x64x8xf32, #tpu.memory_space<vmem>>, vector<1x64x8xf32>,
    return
  }
  func.func @transform_0(%arg0: i32) -> (i32, i32, i32, i32) {
    %c0_i32 = arith.constant 0 : i32
    %c0_i32_0 = arith.constant 0 : i32
    %c0_i32_1 = arith.constant 0 : i32
    %c0_i32_2 = arith.constant 0 : i32
    return %arg0, %c0_i32, %c0_i32_0, %c0_i32_1 : i32, i32, i32, i32
  }
  func.func @transform_1(%arg0: i32) -> (i32, i32) {
    %c0_i32 = arith.constant 0 : i32
    %c0_i32_0 = arith.constant 0 : i32
    %c0_i32_1 = arith.constant 0 : i32
    return %c0_i32, %c0_i32_0 : i32, i32
  }
  func.func @transform_2(%arg0: i32) -> (i32, i32) {
    %c0_i32 = arith.constant 0 : i32
    %c0_i32_0 = arith.constant 0 : i32
    %c0_i32_1 = arith.constant 0 : i32
    return %c0_i32, %c0_i32_0 : i32, i32
  }
  func.func @transform_3(%arg0: i32) -> (i32, i32) {
    %c0_i32 = arith.constant 0 : i32
    %c0_i32_0 = arith.constant 0 : i32
    %c0_i32_1 = arith.constant 0 : i32
    return %c0_i32, %c0_i32_0 : i32, i32
  }
  func.func @transform_4(%arg0: i32) -> (i32, i32) {
    %c0_i32 = arith.constant 0 : i32
    %c0_i32_0 = arith.constant 0 : i32
    %c0_i32_1 = arith.constant 0 : i32
    return %c0_i32, %c0_i32_0 : i32, i32
  }
  func.func @transform_5(%arg0: i32) -> (i32, i32) {
    %c0_i32 = arith.constant 0 : i32
    %c0_i32_0 = arith.constant 0 : i32
    %c0_i32_1 = arith.constant 0 : i32
    return %c0_i32, %c0_i32_0 : i32, i32
  }
  func.func @transform_6(%arg0: i32) -> (i32, i32) {
    %c0_i32 = arith.constant 0 : i32
    %c0_i32_0 = arith.constant 0 : i32
    %c0_i32_1 = arith.constant 0 : i32
    return %c0_i32, %c0_i32_0 : i32, i32
  }
  func.func @transform_7(%arg0: i32) -> (i32, i32) {
    %c0_i32 = arith.constant 0 : i32
    %c0_i32_0 = arith.constant 0 : i32
    %c0_i32_1 = arith.constant 0 : i32
    return %c0_i32, %c0_i32_0 : i32, i32
  }
  func.func @transform_8(%arg0: i32) -> (i32, i32) {
    %c0_i32 = arith.constant 0 : i32
    %c0_i32_0 = arith.constant 0 : i32
    %c0_i32_1 = arith.constant 0 : i32
    return %c0_i32, %c0_i32_0 : i32, i32
  }
  func.func @transform_9(%arg0: i32) -> (i32, i32, i32) {
    %c0_i32 = arith.constant 0 : i32
    %c0_i32_0 = arith.constant 0 : i32
    %c0_i32_1 = arith.constant 0 : i32
    %c0_i32_2 = arith.constant 0 : i32
    return %c0_i32, %c0_i32_0, %c0_i32_1 : i32, i32, i32
  }
  func.func @transform_10(%arg0: i32) -> (i32, i32) {
    %c0_i32 = arith.constant 0 : i32
    %c0_i32_0 = arith.constant 0 : i32
    %c0_i32_1 = arith.constant 0 : i32
    return %c0_i32, %c0_i32_0 : i32, i32
  }
  func.func @transform_11(%arg0: i32) -> (i32, i32) {
    %c0_i32 = arith.constant 0 : i32
    %c0_i32_0 = arith.constant 0 : i32
    %c0_i32_1 = arith.constant 0 : i32
    return %c0_i32, %c0_i32_0 : i32, i32
  }
  func.func @transform_12(%arg0: i32) -> (i32, i32) {
    %c0_i32 = arith.constant 0 : i32
    %c0_i32_0 = arith.constant 0 : i32
    %c0_i32_1 = arith.constant 0 : i32
    return %c0_i32, %c0_i32_0 : i32, i32
  }
  func.func @transform_13(%arg0: i32) -> (i32, i32) {
    %c0_i32 = arith.constant 0 : i32
    %c0_i32_0 = arith.constant 0 : i32
    %c0_i32_1 = arith.constant 0 : i32
    return %c0_i32, %c0_i32_0 : i32, i32
  }
  func.func @transform_14(%arg0: i32) -> (i32, i32) {
    %c0_i32 = arith.constant 0 : i32
    %c0_i32_0 = arith.constant 0 : i32
    %c0_i32_1 = arith.constant 0 : i32
    return %c0_i32, %c0_i32_0 : i32, i32
  }
  func.func @transform_15(%arg0: i32) -> (i32, i32, i32) {
    %c0_i32 = arith.constant 0 : i32
    %c0_i32_0 = arith.constant 0 : i32
    %c0_i32_1 = arith.constant 0 : i32
    return %arg0, %c0_i32, %c0_i32_0 : i32, i32, i32
  }
}

</mosaic_0001>

<bundles_post_ra>
// kernel: tpu_custom_call.1
= control target key start
LH: loop header
LB: loop body
LE: loop exit
PB: predicated region body
PF: predicated region fallthrough
CT: control target
= control target key end

     0   :  { %s3227_s18 = smov 0   ;;  %s3731_s0 = inlined_call_operand.vmem [shape: f32[2,4,16,4], index: 0, kind: input, shape index: {}]   ;;  %s3732_s1 = inlined_call_operand.vmem [shape: f32[16,16], index: 1, kind: input, shape index: {}]   ;;  %s3733_s2 = inlined_call_operand.vmem [shape: f32[16,16], index: 2, kind: input, shape index: {}]   ;;  %s3734_s3 = inlined_call_operand.vmem [shape: f32[16,1], index: 3, kind: input, shape index: {}]   ;;  %s3735_s4 = inlined_call_operand.vmem [shape: f32[4,16], index: 4, kind: input, shape index: {}]   ;;  %s3736_s5 = inlined_call_operand.vmem [shape: f32[1,4], index: 5, kind: input, shape index: {}]   ;;  %s3737_s6 = inlined_call_operand.vmem [shape: f32[4,4], index: 6, kind: input, shape index: {}]   ;;  %s3738_s7 = inlined_call_operand.vmem [shape: f32[4,4], index: 7, kind: input, shape index: {}]   ;;  %s3739_s8 = inlined_call_operand.vmem [shape: f32[24,8], index: 8, kind: input, shape index: {}]   ;;  %s3740_s9 = inlined_call_operand.vmem [shape: f32[3,8,8], index: 9, kind: input, shape index: {}]   ;;  %s3741_s10 = inlined_call_operand.vmem [shape: f32[1,8], index: 10, kind: input, shape index: {}]   ;;  %s3742_s11 = inlined_call_operand.vmem [shape: f32[4,8], index: 11, kind: input, shape index: {}]   ;;  %s3743_s12 = inlined_call_operand.vmem [shape: f32[1,8], index: 12, kind: input, shape index: {}]   ;;  %s3744_s13 = inlined_call_operand.vmem [shape: f32[1,8], index: 13, kind: input, shape index: {}]   ;;  %s3745_s14 = inlined_call_operand.vmem [shape: f32[1,8], index: 14, kind: input, shape index: {}]   ;;  %s3746_s15 = inlined_call_operand.vmem [shape: f32[2,64,8], index: 15, kind: output, shape index: {}]  }
   0x1 LB: > { %s2693_s19 = sadd.s32 4294967295, %s3131_s18   ;;  %p2697_p0 = scmp.ge.s32.totalorder %s3131_s18, 1  ;;  %s3131_s18 = sphi %s3227_s18, %s25_s18  }
   0x2   : > { %p437_p1 = scmp.lt.s32.totalorder %s3131_s18, 3 }
   0x4   : > { %p438_p2 = pnand %p2697_p0, %p437_p1 }
   0x5   : > { %v503_v0 = vld [vmem:[%s3734_s3] sm:$0xff] (!%p438_p2)  ;;  %v3133_v1 = vmov (!%p438_p2), 0   ;;  %v504_v2 = vld [vmem:[%s3734_s3 + $0x8] sm:$0xff] (!%p438_p2)  ;;  %p485_p3 = scmp.lt.s32.totalorder (!%p438_p2), %s2693_s19, 1  ;;  %vm573_vm0 = vcmask (!%p438_p2), 1043456   ;;  %v3134_v4 = vmov (!%p438_p2), 0.0  }
   0x6   : > { %441 = sbr.rel (%p438_p2) target bundleno = 2822 (0xb06), region = 80  ;;  %3092 = vset.pattern.permute.xlu0 (!%p438_p2), %v3133_v1  ;;  %v560_v3 = vld [vmem:[%s3735_s4] sm:$0xf] (!%p438_p2)  ;;  %2847 = vmatprep.subr.mxu0 (!%p438_p2), %v3134_v4  ;;  %vm3135_vm1 = vmmov (!%p438_p2), 0   ;;  %vm523_vm2 = vcmask (!%p438_p2), 31744   ;;  %vm565_vm3 = vcmask (!%p438_p2), 1041409  }
   0x7   : > { %507 = vperm.xlu0 (!%p438_p2), %3092, %v503_v0   ;;  %2849 = vmatprep.mubr.msk.f32.mxu0 (!%p438_p2), %vm3135_vm1, %v3134_v4  ;;  %v2704_v7 = vld [vmem:[%s3736_s5] ss:$0 sm:$0xff] (!%p438_p2)  ;;  %vm567_vm4 = vcmask (!%p438_p2), 1042434   ;;  %vm569_vm5 = vcmask (!%p438_p2), 1043459   ;;  %vm707_vm6 = vcmask (!%p438_p2), 130112   ;;  %vm739_vm7 = vcmask (!%p438_p2), 130048  }
   0x8   : > { %2848 = vmatpush3.msk.msra.mxu0 (!%p438_p2), %vm573_vm0, %v560_v3  ;;  %2852 = vmatprep.subr.mxu1 (!%p438_p2), %v3134_v4  ;;  %vm897_vm8 = vcmask (!%p438_p2), 27648   ;;  %s3136_s23 = smov (!%p438_p2), 126   ;;  %s3137_s24 = smov (!%p438_p2), 127   ;;  %vm1067_vm9 = vcmask (!%p438_p2), 64512   ;;  %vm1070_vm10 = vcmask (!%p438_p2), 97280   ;;  %vm1455_vm11 = vcmask (!%p438_p2), 195584  }
   0x9   : > { %2854 = vmatprep.mubr.msk.f32.mxu1 (!%p438_p2), %vm3135_vm1, %v3134_v4  ;;  %2857 = vmatprep.subr.mxu0 (!%p438_p2), %v3134_v4  ;;  %s3138_s25 = smov (!%p438_p2), 125   ;;  %1397 = vst.msk [vmem:[#allocation2] sm:$0xff] (!%p438_p2), %vm1067_vm9, %v3134_v4  ;;  %1398 = vst.msk [vmem:[#allocation2 + $0x8] sm:$0xff] (!%p438_p2), %vm1067_vm9, %v3134_v4  ;;  %vm1452_vm12 = vcmask (!%p438_p2), 162816  }
   0xa   : > { %1399 = vst.msk [vmem:[#allocation2 + $0x50] sm:$0xff] (!%p438_p2), %vm1067_vm9, %v3134_v4  ;;  %1400 = vst.msk [vmem:[#allocation2 + $0x58] sm:$0xff] (!%p438_p2), %vm1067_vm9, %v3134_v4 }
   0xb   : > { %512 = vperm.xlu0 (!%p438_p2), %3092, %v504_v2  }
   0xd   : > { %s3748_s19 = smov (!%p485_p3, %s2693_s19), 1 }
   0xe   : > { %s2767_s26 = sshll.u32 %s3748_s19, 6 }
   0xf   : > { %s3260_s29 = scalar_lea.vmem %s3731_s0, %s2767_s26 }
  0x10   : > { %v3263_v5 = vld [vmem:[%s3260_s29] sm:$0xff]  ;;  %v3266_v6 = vld [vmem:[%s3260_s29 + $0x8] sm:$0xff]  ;;  %v3274_v10 = vld [vmem:[%s3260_s29 + $0x10] sm:$0xff] }
  0x11   : > { %v654_v8 = vmul.f32 %v2704_v7, %v3263_v5  ;;  %v655_v9 = vmul.f32 %v2704_v7, %v3266_v6  ;;  %v3278_v12 = vld [vmem:[%s3260_s29 + $0x18] sm:$0xff]  ;;  %v656_v13 = vmul.f32 %v2704_v7, %v3274_v10  ;;  %v3284_v16 = vld [vmem:[%s3260_s29 + $0x20] sm:$0xff]  ;;  %v3290_v20 = vld [vmem:[%s3260_s29 + $0x28] sm:$0xff] }
  0x12   : > { %v657_v15 = vmul.f32 %v2704_v7, %v3278_v12  ;;  %v658_v19 = vmul.f32 %v2704_v7, %v3284_v16  ;;  %v659_v22 = vmul.f32 %v2704_v7, %v3290_v20  ;;  %v3295_v23 = vld [vmem:[%s3260_s29 + $0x30] sm:$0xff]  ;;  %v3300_v26 = vld [vmem:[%s3260_s29 + $0x38] sm:$0xff] }
  0x13   : > { %v662_v11 = vsel %vm523_vm2, %v654_v8, 0.0  ;;  %v665_v14 = vsel %vm523_vm2, %v655_v9, 0.0  ;;  %v668_v17 = vsel %vm523_vm2, %v656_v13, 0.0  ;;  %v660_v25 = vmul.f32 %v2704_v7, %v3295_v23 }
  0x14   : > { %663 = vadd.xlane.f32.xlu1 %v662_v11  ;;  %v671_v18 = vsel %vm523_vm2, %v657_v15, 0.0  ;;  %v674_v21 = vsel %vm523_vm2, %v658_v19, 0.0  ;;  %v677_v24 = vsel %vm523_vm2, %v659_v22, 0.0  ;;  %v661_v28 = vmul.f32 %v2704_v7, %v3300_v26 }
  0x15   : > { %v680_v27 = vsel %vm523_vm2, %v660_v25, 0.0  ;;  %v696_v22 = vlaneseq }
  0x16   : > { %v683_v29 = vsel %vm523_vm2, %v661_v28, 0.0 }
  0x17   : > { %v697_v25 = vand.u32 127, %v696_v22  ;;  %v699_v28 = vshrl.u32 %v696_v22, 7 }
  0x18   : > { %666 = vadd.xlane.f32.xlu1 %v665_v14 }
  0x1c   : > { %672 = vadd.xlane.f32.xlu1 %v671_v18 }
  0x20   : > { %675 = vadd.xlane.f32.xlu1 %v674_v21 }
  0x24   : > { %678 = vadd.xlane.f32.xlu1 %v677_v24 }
  0x28   : > { %681 = vadd.xlane.f32.xlu1 %v680_v27 }
  0x2a   : > { %669 = vadd.xlane.f32.xlu0 %v668_v17 }
  0x2c   : > { %684 = vadd.xlane.f32.xlu1 %v683_v29  ;;  %v702_v29 = vadd.s32 4294967288, %v697_v25 }
  0x86   : > { %v508_v30 = vpop.permute.xlu0 %507 }
  0x87   : > { %v515_v31 = vmul.f32 %v508_v30, %v3263_v5  ;;  %v517_v32 = vmul.f32 %v508_v30, %v3274_v10  ;;  %v519_v33 = vmul.f32 %v508_v30, %v3284_v16  ;;  %v521_v34 = vmul.f32 %v508_v30, %v3295_v23 }
  0x89   : > { %v524_v40 = vsel %vm523_vm2, %v515_v31, 0.0  ;;  %v533_v41 = vsel %vm523_vm2, %v517_v32, 0.0  ;;  %v542_v42 = vsel %vm523_vm2, %v519_v33, 0.0  ;;  %v551_v43 = vsel %vm523_vm2, %v521_v34, 0.0 }
  0x8a   : > { %v513_v35 = vpop.permute.xlu0 %512  ;;  %v700_v31 = vsub.s32 %v697_v25, %v699_v28  ;;  %v705_v32 = vsub.s32 %v702_v29, %v699_v28 }
  0x8b   : > { %v516_v36 = vmul.f32 %v513_v35, %v3266_v6  ;;  %v518_v37 = vmul.f32 %v513_v35, %v3278_v12  ;;  %v520_v38 = vmul.f32 %v513_v35, %v3290_v20  ;;  %v522_v39 = vmul.f32 %v513_v35, %v3300_v26 }
  0x8d   : > { %v525_v44 = vsel %vm523_vm2, %v516_v36, 0.0  ;;  %v534_v45 = vsel %vm523_vm2, %v518_v37, 0.0  ;;  %v543_v46 = vsel %vm523_vm2, %v520_v38, 0.0  ;;  %v552_v47 = vsel %vm523_vm2, %v522_v39, 0.0 }
  0x8e   : > { %v526_v48 = vadd.f32 %v525_v44, %v524_v40  ;;  %v535_v49 = vadd.f32 %v534_v45, %v533_v41  ;;  %v544_v50 = vadd.f32 %v543_v46, %v542_v42  ;;  %v553_v51 = vadd.f32 %v552_v47, %v551_v43 }
  0x90   : > { %v527_v52 = vrot.slane %v526_v48, 4  ;;  %v536_v53 = vrot.slane %v535_v49, 4  ;;  %v545_v54 = vrot.slane %v544_v50, 4  ;;  %v554_v55 = vrot.slane %v553_v51, 4 }
  0x92   : > { %v528_v56 = vadd.f32 %v527_v52, %v526_v48  ;;  %v537_v57 = vadd.f32 %v536_v53, %v535_v49  ;;  %v546_v58 = vadd.f32 %v545_v54, %v544_v50  ;;  %v555_v59 = vadd.f32 %v554_v55, %v553_v51  ;;  %v687_v55 = vld [vmem:[%s3737_s6] sm:$0xf] }
  0x94   : > { %v529_v60 = vrot.slane %v528_v56, 2  ;;  %v538_v61 = vrot.slane %v537_v57, 2  ;;  %v547_v62 = vrot.slane %v546_v58, 2  ;;  %v556_v63 = vrot.slane %v555_v59, 2 }
  0x96   : > { %v530_v0 = vadd.f32 %v529_v60, %v528_v56  ;;  %v539_v1 = vadd.f32 %v538_v61, %v537_v57  ;;  %v548_v2 = vadd.f32 %v547_v62, %v546_v58  ;;  %v557_v3 = vadd.f32 %v556_v63, %v555_v59  ;;  %v686_v62 = vld [vmem:[%s3738_s7] sm:$0xf] }
  0x98   : > { %v531_v7 = vrot.slane %v530_v0, 1  ;;  %v540_v8 = vrot.slane %v539_v1, 1  ;;  %v549_v9 = vrot.slane %v548_v2, 1  ;;  %v558_v11 = vrot.slane %v557_v3, 1 }
  0x9a   : > { %v532_v13 = vadd.f32 %v531_v7, %v530_v0  ;;  %v541_v14 = vadd.f32 %v540_v8, %v539_v1  ;;  %v550_v15 = vadd.f32 %v549_v9, %v548_v2  ;;  %v559_v17 = vadd.f32 %v558_v11, %v557_v3 }
  0x9c   : > { %v566_v18 = vsel %vm565_vm3, %v541_v14, %v532_v13 }
  0x9d   : > { %v568_v19 = vsel %vm567_vm4, %v550_v15, %v566_v18 }
  0x9e   : > { %v570_v21 = vsel %vm569_vm5, %v559_v17, %v568_v19 }
  0x9f   : > { %2850 = vmatmul.mubr.msk.f32.vlgmr.msra.gmra.mrb[0].mxu0 %vm523_vm2, %v570_v21 }
  0xa0   : > { %2859 = vmatprep.mubr.msk.f32.mxu0 %vm3135_vm1, %v3134_v4 }
  0xa1   : > { %v664_v24 = vpop.xlane.xlu1 %663 }
  0xa2   : > { %v701_v35 = vrot.slane %v664_v24, %v700_v31 }
  0xa5   : > { %v667_v27 = vpop.xlane.xlu1 %666 }
  0xa6   : > { %v706_v36 = vrot.slane %v667_v27, %v705_v32 }
  0xa8   : > { %v708_v42 = vsel %vm707_vm6, %v706_v36, %v701_v35 }
  0xa9   : > { %v673_v30 = vpop.xlane.xlu1 %672 }
  0xaa   : > { %v716_v37 = vrot.slane %v673_v30, %v705_v32 }
  0xad   : > { %v676_v33 = vpop.xlane.xlu1 %675 }
  0xae   : > { %v721_v40 = vrot.slane %v676_v33, %v700_v31 }
  0xb1   : > { %v679_v39 = vpop.xlane.xlu1 %678 }
  0xb2   : > { %v725_v41 = vrot.slane %v679_v39, %v705_v32 }
  0xb4   : > { %v726_v45 = vsel %vm707_vm6, %v725_v41, %v721_v40 }
  0xb5   : > { %v682_v44 = vpop.xlane.xlu1 %681 }
  0xb6   : > { %v730_v47 = vrot.slane %v682_v44, %v700_v31 }
  0xb7   : > { %v670_v34 = vpop.xlane.xlu0 %669 }
  0xb8   : > { %v712_v38 = vrot.slane %v670_v34, %v700_v31 }
  0xb9   : > { %v685_v48 = vpop.xlane.xlu1 %684 }
  0xba   : > { %v717_v43 = vsel %vm707_vm6, %v716_v37, %v712_v38  ;;  %v734_v49 = vrot.slane %v685_v48, %v705_v32 }
  0xbb   : > { %v736_v46 = vsel %vm565_vm3, %v717_v43, %v708_v42 }
  0xbc   : > { %v737_v50 = vsel %vm567_vm4, %v726_v45, %v736_v46  ;;  %v735_v51 = vsel %vm707_vm6, %v734_v49, %v730_v47 }
  0xbd   : > { %v738_v52 = vsel %vm569_vm5, %v735_v51, %v737_v50 }
  0xbe   : > { %2853 = vmatpush3.xpose.msk.msra.mxu1 %vm739_vm7, %v738_v52 }
 0x172   : > { %v643_v53 = vpop.f32.mrb[0].mxu0 }
 0x173   : > { %v2851_v54 = vpop.f32.mrb[1].mxu0  ;;  %2855 = vmatmul.mubr.msk.f32.vlgmr.msra.gmra.mrb[0].mxu1 %vm739_vm7, %v643_v53 }
 0x246   : > { %v811_v56 = vpop.f32.mrb[0].mxu1 }
 0x247   : > { %v812_v57 = vadd.f32 %v811_v56, %v687_v55  ;;  %v2856_v58 = vpop.f32.mrb[1].mxu1 }
 0x249   : > { %v2707_v59 = vmul.f32 -1.442695, %v812_v57 }
 0x24b   : > { %3093 = vpow2.f32 %v2707_v59 }
 0x255   : > { %v3094_v60 = vpop.eup %3093 }
 0x256   : > { %v818_v61 = vadd.f32 1.0, %v3094_v60 }
 0x258   : > { %3095 = vrcp.f32 %v818_v61 }
 0x262   : > { %v3096_v63 = vpop.eup %3095 }
 0x263   : > { %2858 = vmatpush3.msk.msra.mxu0 %vm573_vm0, %v3096_v63 }
 0x264   : > { %2860 = vmatmul.mubr.msk.f32.vlgmr.msra.gmra.mrb[2].mxu0 %vm523_vm2, %v686_v62 }
 0x337   : > { %v893_v0 = vpop.f32.mrb[2].mxu0 }
 0x338   : > { %v898_v1 = vsel %vm897_vm8, %v893_v0, -inf  ;;  %v2861_v2 = vpop.f32.mrb[3].mxu0 }
 0x339   : > { %899 = vmax.xlane.f32.xlu1 %v898_v1 }
 0x3c6   : > { %v900_v3 = vpop.xlane.xlu1 %899 }
 0x3c7   : > { %v901_v7 = vsub.f32 %v893_v0, %v900_v3 }
 0x3c9   : > { %v902_v8 = vmul.f32 1.442695, %v901_v7 }
 0x3cb   : > { %3097 = vpow2.f32 %v902_v8 }
 0x3d5   : > { %v3098_v9 = vpop.eup %3097 }
 0x3d6   : > { %v904_v11 = vsel %vm897_vm8, %v3098_v9, 0.0 }
 0x3d7   : > { %905 = vadd.xlane.f32.xlu1 %v904_v11 }
 0x464   : > { %v906_v13 = vpop.xlane.xlu1 %905 }
 0x465   : > { %3099 = vrcp.f32 %v906_v13 }
 0x46f   : > { %v3100_v14 = vpop.eup %3099 }
 0x470   : > { %v908_v15 = vmul.f32 %v3100_v14, %v3098_v9 }
 0x472   : > { %924 = vrot.lane.b32.xlu0 %v908_v15, %s3136_s23  ;;  %915 = vrot.lane.b32.xlu1 %v908_v15, %s3137_s24  ;;  %3038 = vpush %v908_v15  ;;  %v942_v17 = vrot.slane %v908_v15, 1  ;;  %v975_v18 = vrot.slane %v908_v15, 2  ;;  %v1008_v19 = vrot.slane %v908_v15, 3 }
 0x476   : > { %933 = vrot.lane.b32.xlu1 %v908_v15, %s3138_s25  ;;  %957 = vrot.lane.b32.xlu0 %v942_v17, %s3136_s23 }
 0x47a   : > { %981 = vrot.lane.b32.xlu0 %v975_v18, %s3137_s24  ;;  %948 = vrot.lane.b32.xlu1 %v942_v17, %s3137_s24 }
 0x47e   : > { %999 = vrot.lane.b32.xlu0 %v975_v18, %s3138_s25  ;;  %966 = vrot.lane.b32.xlu1 %v942_v17, %s3138_s25 }
 0x482   : > { %1023 = vrot.lane.b32.xlu0 %v1008_v19, %s3136_s23  ;;  %990 = vrot.lane.b32.xlu1 %v975_v18, %s3136_s23 }
 0x486   : > { %1014 = vrot.lane.b32.xlu1 %v1008_v19, %s3137_s24 }
 0x48a   : > { %1032 = vrot.lane.b32.xlu1 %v1008_v19, %s3138_s25 }
 0x4a3   : > { %s3039_s27 = spop %3038 }
 0x4a4   : > { %v911_v35 = vstv %s3039_s27 }
 0x4a5   : > { %v913_v36 = vmul.f32 %v911_v35, %v3263_v5  ;;  %v914_v38 = vmul.f32 %v911_v35, %v3266_v6 }
 0x4e4   : > { %v925_v21 = vpop.permute.xlu0 %924  ;;  %v916_v22 = vpop.permute.xlu1 %915 }
 0x4e5   : > { %3040 = vpush %v916_v22 }
 0x4e6   : > { %3042 = vpush %v925_v21 }
 0x4e8   : > { %v934_v24 = vpop.permute.xlu1 %933  ;;  %v958_v25 = vpop.permute.xlu0 %957 }
 0x4e9   : > { %3044 = vpush %v934_v24 }
 0x4ea   : > { %3046 = vpush %v942_v17 }
 0x4ec   : > { %v949_v27 = vpop.permute.xlu1 %948  ;;  %v982_v28 = vpop.permute.xlu0 %981 }
 0x4ed   : > { %3048 = vpush %v949_v27 }
 0x4ee   : > { %3050 = vpush %v958_v25 }
 0x4f0   : > { %v967_v29 = vpop.permute.xlu1 %966  ;;  %v1000_v30 = vpop.permute.xlu0 %999 }
 0x4f1   : > { %3052 = vpush %v967_v29 }
 0x4f2   : > { %3054 = vpush %v975_v18 }
 0x4f3   : > { %3056 = vpush %v982_v28 }
 0x4f4   : > { %v991_v31 = vpop.permute.xlu1 %990  ;;  %v1024_v33 = vpop.permute.xlu0 %1023 }
 0x4f5   : > { %3058 = vpush %v991_v31 }
 0x4f6   : > { %3060 = vpush %v1000_v30 }
 0x4f7   : > { %3062 = vpush %v1008_v19 }
 0x4f8   : > { %v1015_v32 = vpop.permute.xlu1 %1014 }
 0x4f9   : > { %3064 = vpush %v1015_v32 }
 0x4fa   : > { %3066 = vpush %v1024_v33 }
 0x4fc   : > { %v1033_v34 = vpop.permute.xlu1 %1032 }
 0x4fd   : > { %3068 = vpush %v1033_v34 }
 0x516   : > { %s3041_s28 = spop %3040 }
 0x517   : > { %v918_v37 = vstv %s3041_s28  ;;  %s3043_s30 = spop %3042 }
 0x518   : > { %v920_v39 = vmul.f32 %v918_v37, %v3274_v10  ;;  %v921_v40 = vmul.f32 %v918_v37, %v3278_v12  ;;  %v927_v41 = vstv %s3043_s30  ;;  %s3139_s30 = smov 4  }
 0x519   : > { %v929_v44 = vmul.f32 %v927_v41, %v3284_v16  ;;  %v930_v45 = vmul.f32 %v927_v41, %v3290_v20  ;;  %v1073_v41 = vld [vmem:[%s3732_s1] sm:$0xff] }
 0x51a   : > { %v922_v42 = vadd.f32 %v920_v39, %v913_v36  ;;  %v923_v43 = vadd.f32 %v921_v40, %v914_v38  ;;  %s3045_s16 = spop %3044  ;;  %2866 = vmatprep.mubr.msk.f32.mxu1 %vm739_vm7, %v1073_v41  ;;  %2873 = vmatprep.mubr.msk.f32.mxu0 %vm739_vm7, %v1073_v41 }
 0x51b   : > { %v936_v46 = vstv %s3045_s16  ;;  %s3047_s17 = spop %3046 }
 0x51c   : > { %v931_v47 = vadd.f32 %v929_v44, %v922_v42  ;;  %v932_v48 = vadd.f32 %v930_v45, %v923_v43  ;;  %v938_v49 = vmul.f32 %v936_v46, %v3295_v23  ;;  %v939_v50 = vmul.f32 %v936_v46, %v3300_v26 }
 0x51d   : > { %v944_v51 = vstv %s3047_s17 }
 0x51e   : > { %v3356_v52 = vadd.f32 %v938_v49, %v931_v47  ;;  %v3358_v53 = vadd.f32 %v939_v50, %v932_v48  ;;  %s3049_s20 = spop %3048  ;;  %v946_v54 = vmul.f32 %v944_v51, %v3263_v5  ;;  %v947_v56 = vmul.f32 %v944_v51, %v3266_v6 }
 0x51f   : > { %v951_v55 = vstv %s3049_s20  ;;  %s3051_s21 = spop %3050 }
 0x520   : > { %v953_v57 = vmul.f32 %v951_v55, %v3274_v10  ;;  %v954_v58 = vmul.f32 %v951_v55, %v3278_v12  ;;  %v960_v59 = vstv %s3051_s21 }
 0x521   : > { %v962_v4 = vmul.f32 %v960_v59, %v3284_v16  ;;  %v963_v62 = vmul.f32 %v960_v59, %v3290_v20  ;;  %v1236_v59 = vld [vmem:[%s3733_s2 + $0x8] sm:$0xff] }
 0x522   : > { %v955_v60 = vadd.f32 %v953_v57, %v946_v54  ;;  %v956_v61 = vadd.f32 %v954_v58, %v947_v56  ;;  %s3053_s22 = spop %3052  ;;  %v1235_v58 = vld [vmem:[%s3733_s2] sm:$0xff] }
 0x523   : > { %v969_v63 = vstv %s3053_s22  ;;  %s3055_s23 = spop %3054  ;;  %s3143_s22 = smov 120  }
 0x524   : > { %v964_v0 = vadd.f32 %v962_v4, %v955_v60  ;;  %v965_v1 = vadd.f32 %v963_v62, %v956_v61  ;;  %v971_v2 = vmul.f32 %v969_v63, %v3295_v23  ;;  %v972_v3 = vmul.f32 %v969_v63, %v3300_v26  ;;  %s3057_s24 = spop %3056 }
 0x525   : > { %v977_v7 = vstv %s3055_s23  ;;  %v984_v8 = vstv %s3057_s24  ;;  %s3140_s23 = smov 8   ;;  %s3141_s24 = smov 12  }
 0x526   : > { %v973_v9 = vadd.f32 %v971_v2, %v964_v0  ;;  %v974_v11 = vadd.f32 %v972_v3, %v965_v1  ;;  %v979_v13 = vmul.f32 %v977_v7, %v3263_v5  ;;  %v980_v14 = vmul.f32 %v977_v7, %v3266_v6  ;;  %s3059_s25 = spop %3058 }
 0x527   : > { %v986_v15 = vmul.f32 %v984_v8, %v3274_v10  ;;  %v987_v17 = vmul.f32 %v984_v8, %v3278_v12  ;;  %v993_v18 = vstv %s3059_s25  ;;  %s3061_s27 = spop %3060  ;;  %s3142_s25 = smov 124  }
 0x528   : > { %v995_v19 = vmul.f32 %v993_v18, %v3284_v16  ;;  %v996_v21 = vmul.f32 %v993_v18, %v3290_v20  ;;  %v1002_v22 = vstv %s3061_s27  ;;  %s3063_s28 = spop %3062  ;;  %1045 = vrot.lane.b32.xlu1 %v974_v11, %s3139_s30  ;;  %1043 = vrot.lane.b32.xlu0 %v973_v9, %s3139_s30  ;;  %s3144_s27 = smov 116   ;;  %v1401_v9 = vld [vmem:[%s3739_s8] sm:$0xff] }
 0x529   : > { %v988_v24 = vadd.f32 %v986_v15, %v979_v13  ;;  %v989_v25 = vadd.f32 %v987_v17, %v980_v14  ;;  %v1010_v27 = vstv %s3063_s28  ;;  %v1004_v30 = vmul.f32 %v1002_v22, %v3295_v23  ;;  %s3145_s28 = smov 16   ;;  %v1402_v11 = vld [vmem:[%s3739_s8 + $0x8] sm:$0xff] }
 0x52a   : > { %s3065_s16 = spop %3064  ;;  %v1005_v31 = vmul.f32 %v1002_v22, %v3300_v26  ;;  %v1012_v32 = vmul.f32 %v1010_v27, %v3263_v5  ;;  %v1013_v33 = vmul.f32 %v1010_v27, %v3266_v6  ;;  %v3469_v14 = vpack.c.bf16 %v1402_v11, %v1401_v9  ;;  %v3487_v22 = vld [vmem:[%s3739_s8 + $0x10] sm:$0xff] }
 0x52b   : > { %v997_v28 = vadd.f32 %v995_v19, %v988_v24  ;;  %v998_v29 = vadd.f32 %v996_v21, %v989_v25  ;;  %s3067_s17 = spop %3066  ;;  %v1017_v34 = vstv %s3065_s16  ;;  %s3146_s16 = smov 20  }
 0x52c   : > { %v1026_v35 = vstv %s3067_s17  ;;  %v1019_v38 = vmul.f32 %v1017_v34, %v3274_v10  ;;  %v1020_v39 = vmul.f32 %v1017_v34, %v3278_v12 }
 0x52d   : > { %v1006_v36 = vadd.f32 %v1004_v30, %v997_v28  ;;  %v1007_v37 = vadd.f32 %v1005_v31, %v998_v29  ;;  %v1028_v40 = vmul.f32 %v1026_v35, %v3284_v16  ;;  %v1029_v5 = vmul.f32 %v1026_v35, %v3290_v20 }
 0x52e   : > { %s3069_s20 = spop %3068  ;;  %v1021_v42 = vadd.f32 %v1019_v38, %v1012_v32  ;;  %v1022_v43 = vadd.f32 %v1020_v39, %v1013_v33 }
 0x52f   : > { %v1035_v6 = vstv %s3069_s20  ;;  %1053 = vrot.lane.b32.xlu1 %v1007_v37, %s3140_s23  ;;  %1051 = vrot.lane.b32.xlu0 %v1006_v36, %s3140_s23  ;;  %s3704_s20 = scalar_lea.vmem %s3746_s15, %s2767_s26 }
 0x530   : > { %v1037_v10 = vmul.f32 %v1035_v6, %v3295_v23  ;;  %v1038_v12 = vmul.f32 %v1035_v6, %v3300_v26  ;;  %v1030_v16 = vadd.f32 %v1028_v40, %v1021_v42  ;;  %v1031_v44 = vadd.f32 %v1029_v5, %v1022_v43 }
 0x532   : > { %v1039_v45 = vadd.f32 %v1037_v10, %v1030_v16  ;;  %v1040_v46 = vadd.f32 %v1038_v12, %v1031_v44 }
 0x534   : > { %1061 = vrot.lane.b32.xlu1 %v1040_v46, %s3141_s24  ;;  %1059 = vrot.lane.b32.xlu0 %v1039_v45, %s3141_s24 }
 0x59a   : > { %v1046_v20 = vpop.permute.xlu1 %1045  ;;  %v1044_v47 = vpop.permute.xlu0 %1043 }
 0x59b   : > { %v1066_v23 = vsel %vm523_vm2, %v3358_v53, %v1046_v20  ;;  %v1065_v26 = vsel %vm523_vm2, %v3356_v52, %v1044_v47  ;;  %v1074_v53 = vld [vmem:[%s3732_s1 + $0x8] sm:$0xff] }
 0x5a1   : > { %v1054_v48 = vpop.permute.xlu1 %1053  ;;  %v1052_v49 = vpop.permute.xlu0 %1051 }
 0x5a2   : > { %v1069_v50 = vsel %vm1067_vm9, %v1066_v23, %v1054_v48  ;;  %v1068_v51 = vsel %vm1067_vm9, %v1065_v26, %v1052_v49 }
 0x5a6   : > { %v1062_v54 = vpop.permute.xlu1 %1061  ;;  %v1060_v55 = vpop.permute.xlu0 %1059 }
 0x5a7   : > { %v3402_v56 = vsel %vm1070_vm10, %v1069_v50, %v1062_v54  ;;  %v3405_v57 = vsel %vm1070_vm10, %v1068_v51, %v1060_v55 }
 0x5a8   : > { %1543 = vrot.lane.b32.xlu0 %v3402_v56, %s3142_s25  ;;  %1541 = vrot.lane.b32.xlu1 %v3405_v57, %s3142_s25  ;;  %v2982_v52 = vpack.c.bf16 %v3402_v56, %v3405_v57 }
 0x5aa   : > { %2983 = vmatprep.subr.bf16.mxu1 %v2982_v52 }
 0x5ab   : > { %2985 = vmatpush3.bf16.msra.mxu1 %v2982_v52 }
 0x5ac   : > { %1424 = vrot.lane.b32.xlu0 %v3402_v56, %s3141_s24  ;;  %1422 = vrot.lane.b32.xlu1 %v3405_v57, %s3141_s24 }
 0x5ad   : > { %2991 = vmatprep.subr.bf16.mxu1 %v2982_v52 }
 0x5ae   : > { %2867 = vmatmul.mubr.msk.f32.vlgmr.msra.gmra.mrb[2].mxu1 %vm739_vm7, %v1074_v53 }
 0x5af   : > { %2993 = vmatpush3.bf16.msra.mxu1 %v2982_v52  ;;  %2880 = vmatprep.mubr.msk.f32.mxu1 %vm739_vm7, %v1235_v58 }
 0x5b0   : > { %1555 = vrot.lane.b32.xlu0 %v3402_v56, %s3140_s23  ;;  %1553 = vrot.lane.b32.xlu1 %v3405_v57, %s3140_s23 }
 0x5b1   : > { %2999 = vmatprep.subr.bf16.mxu1 %v3469_v14 }
 0x5b2   : > { %2881 = vmatmul.mubr.msk.f32.vlgmr.msra.gmra.mrb[4].mxu1 %vm739_vm7, %v1236_v59 }
 0x5b3   : > { %3001 = vmatpush3.bf16.msra.mxu1 %v3469_v14 }
 0x5b4   : > { %1668 = vrot.lane.b32.xlu0 %v3402_v56, %s3143_s22  ;;  %1666 = vrot.lane.b32.xlu1 %v3405_v57, %s3143_s22 }
 0x5b5   : > { %2894 = vmatprep.subr.mxu1 %v3487_v22 }
 0x5b7   : > { %2895 = vmatpush3.msra.mxu1 %v3487_v22 }
 0x5b8   : > { %1678 = vrot.lane.b32.xlu0 %v3405_v57, %s3139_s30  ;;  %1680 = vrot.lane.b32.xlu1 %v3402_v56, %s3139_s30 }
 0x5b9   : > { %3007 = vmatprep.subr.bf16.mxu1 %v3469_v14 }
 0x5bc   : > { %1793 = vrot.lane.b32.xlu0 %v3402_v56, %s3144_s27  ;;  %1791 = vrot.lane.b32.xlu1 %v3405_v57, %s3144_s27 }
 0x61a   : > { %v1544_v60 = vpop.permute.xlu0 %1543  ;;  %v1542_v28 = vpop.permute.xlu1 %1541 }
 0x61e   : > { %v1423_v29 = vpop.permute.xlu1 %1422  ;;  %v1425_v31 = vpop.permute.xlu0 %1424 }
 0x622   : > { %v1554_v30 = vpop.permute.xlu1 %1553  ;;  %v1556_v33 = vpop.permute.xlu0 %1555 }
 0x626   : > { %v1667_v32 = vpop.permute.xlu1 %1666  ;;  %v1669_v35 = vpop.permute.xlu0 %1668 }
 0x62a   : > { %v1681_v34 = vpop.permute.xlu1 %1680  ;;  %v1679_v38 = vpop.permute.xlu0 %1678 }
 0x62e   : > { %v1792_v36 = vpop.permute.xlu1 %1791  ;;  %v1794_v40 = vpop.permute.xlu0 %1793 }
 0x681   : > { %v2868_v61 = vpop.f32.mrb[2].mxu1 }
 0x682   : > { %1408 = vrot.lane.b32.xlu1 %v2868_v61, %s3139_s30  ;;  %v3442_v4 = vpop.f32.mrb[3].mxu1  ;;  %v3445_v62 = vsel %vm523_vm2, %v1544_v60, %v2868_v61 }
 0x683   : > { %1406 = vrot.lane.b32.xlu0 %v3442_v4, %s3139_s30  ;;  %v2986_v63 = vpack.c.bf16 %v2868_v61, %v3442_v4  ;;  %v1571_v20 = vsel %vm523_vm2, %v1542_v28, %v3442_v4 }
 0x685   : > { %2987 = vmatprep.subr.bf16.mxu0 %v2986_v63  ;;  %v2882_v0 = vpop.f32.mrb[4].mxu1 }
 0x686   : > { %1674 = vrot.lane.b32.xlu1 %v2868_v61, %s3142_s25  ;;  %2989 = vmatpush3.bf16.msra.mxu0 %v2986_v63  ;;  %v1309_v1 = vpop.f32.mrb[5].mxu1 }
 0x687   : > { %1672 = vrot.lane.b32.xlu0 %v3442_v4, %s3142_s25  ;;  %v2994_v2 = vpack.c.bf16 %v2882_v0, %v1309_v1 }
 0x689   : > { %2874 = vmatmul.mubr.msk.f32.vlgmr.msra.gmra.mrb[4].mxu0 %vm739_vm7, %v1074_v53  ;;  %2995 = vmatprep.subr.bf16.mxu0 %v2994_v2 }
 0x68a   : > { %1799 = vrot.lane.b32.xlu1 %v2868_v61, %s3143_s22  ;;  %2997 = vmatpush3.bf16.msra.mxu0 %v2994_v2 }
 0x68b   : > { %1797 = vrot.lane.b32.xlu0 %v3442_v4, %s3143_s22  ;;  %2887 = vmatprep.mubr.msk.f32.mxu0 %vm739_vm7, %v1235_v58 }
 0x68c   : > { %3003 = vmatprep.subr.bf16.mxu0 %v3469_v14 }
 0x68d   : > { %2888 = vmatmul.mubr.msk.f32.vlgmr.msra.gmra.mrb[6].mxu0 %vm739_vm7, %v1236_v59 }
 0x68e   : > { %1561 = vrot.lane.b32.xlu1 %v2882_v0, %s3141_s24  ;;  %3005 = vmatpush3.bf16.msra.mxu0 %v3469_v14 }
 0x68f   : > { %1432 = vrot.lane.b32.xlu0 %v2882_v0, %s3145_s28  ;;  %2903 = vmatprep.subr.mxu0 %v3487_v22 }
 0x692   : > { %1686 = vrot.lane.b32.xlu1 %v2882_v0, %s3140_s23  ;;  %2904 = vmatpush3.msra.mxu0 %v3487_v22 }
 0x693   : > { %1684 = vrot.lane.b32.xlu0 %v1309_v1, %s3140_s23  ;;  %3011 = vmatprep.subr.bf16.mxu0 %v3469_v14 }
 0x696   : > { %1430 = vrot.lane.b32.xlu1 %v1309_v1, %s3145_s28 }
 0x69a   : > { %1559 = vrot.lane.b32.xlu1 %v1309_v1, %s3141_s24 }
 0x6f4   : > { %v1409_v37 = vpop.permute.xlu1 %1408 }
 0x6f5   : > { %v1407_v41 = vpop.permute.xlu0 %1406  ;;  %v1445_v54 = vsel %vm523_vm2, %v3402_v56, %v1409_v37 }
 0x6f6   : > { %v1444_v50 = vsel %vm523_vm2, %v3405_v57, %v1407_v41 }
 0x6f8   : > { %v1675_v39 = vpop.permute.xlu1 %1674 }
 0x6f9   : > { %v1673_v43 = vpop.permute.xlu0 %1672 }
 0x6fa   : > { %v1696_v11 = vsel %vm523_vm2, %v1667_v32, %v1673_v43 }
 0x6fc   : > { %v1800_v42 = vpop.permute.xlu1 %1799 }
 0x6fd   : > { %v1798_v6 = vpop.permute.xlu0 %1797 }
 0x700   : > { %v1562_v5 = vpop.permute.xlu1 %1561 }
 0x701   : > { %v1433_v12 = vpop.permute.xlu0 %1432 }
 0x704   : > { %v1687_v10 = vpop.permute.xlu1 %1686 }
 0x705   : > { %v1685_v44 = vpop.permute.xlu0 %1684 }
 0x708   : > { %v1431_v16 = vpop.permute.xlu1 %1430 }
 0x70c   : > { %v1560_v45 = vpop.permute.xlu1 %1559 }
 0x75c   : > { %v2875_v3 = vpop.f32.mrb[4].mxu0 }
 0x75d   : > { %v1232_v7 = vmul.f32 2.0, %v2875_v3  ;;  %v1222_v8 = vpop.f32.mrb[5].mxu0 }
 0x75e   : > { %v1231_v13 = vmul.f32 2.0, %v1222_v8 }
 0x75f   : > { %v3472_v15 = vsub.f32 %v1232_v7, %v3402_v56 }
 0x760   : > { %v3475_v17 = vsub.f32 %v1231_v13, %v3405_v57  ;;  %v2889_v18 = vpop.f32.mrb[6].mxu0  ;;  %v1697_v13 = vsel %vm523_vm2, %v1669_v35, %v1675_v39 }
 0x761   : > { %v1394_v19 = vmul.f32 2.0, %v2889_v18  ;;  %1416 = vrot.lane.b32.xlu0 %v3472_v15, %s3140_s23  ;;  %v1384_v21 = vpop.f32.mrb[7].mxu0 }
 0x762   : > { %1547 = vrot.lane.b32.xlu1 %v3475_v17, %s3139_s30  ;;  %v1393_v25 = vmul.f32 2.0, %v1384_v21  ;;  %v1698_v18 = vsel %vm1067_vm9, %v1696_v11, %v3475_v17  ;;  %v3120_v11 = vld [vmem:[%s3260_s29 + $0x18] sm:$0xff] }
 0x763   : > { %v1396_v24 = vsub.f32 %v1394_v19, %v3402_v56  ;;  %v1699_v19 = vsel %vm1067_vm9, %v1697_v13, %v3472_v15  ;;  %v1700_v28 = vsel %vm1070_vm10, %v1698_v18, %v1679_v38  ;;  %v3121_v13 = vld [vmem:[%s3260_s29 + $0x20] sm:$0xff]  ;;  %v3122_v18 = vld [vmem:[%s3260_s29 + $0x28] sm:$0xff] }
 0x764   : > { %v1395_v27 = vsub.f32 %v1393_v25, %v3405_v57 }
 0x765   : > { %1549 = vrot.lane.b32.xlu0 %v3472_v15, %s3139_s30 }
 0x766   : > { %1567 = vrot.lane.b32.xlu1 %v1396_v24, %s3145_s28 }
 0x769   : > { %1414 = vrot.lane.b32.xlu0 %v3475_v17, %s3140_s23 }
 0x76a   : > { %1692 = vrot.lane.b32.xlu1 %v1396_v24, %s3141_s24 }
 0x76d   : > { %1803 = vrot.lane.b32.xlu0 %v3475_v17, %s3142_s25  ;;  %v1821_v17 = vsel %vm523_vm2, %v1792_v36, %v1798_v6  ;;  %v2316_v6 = vld [vmem:[%s3742_s11] sm:$0xf] }
 0x76e   : > { %1438 = vrot.lane.b32.xlu1 %v1395_v27, %s3146_s16 }
 0x771   : > { %1440 = vrot.lane.b32.xlu0 %v1396_v24, %s3146_s16 }
 0x772   : > { %1805 = vrot.lane.b32.xlu1 %v3472_v15, %s3142_s25  ;;  %v1822_v15 = vsel %vm523_vm2, %v1794_v40, %v1800_v42 }
 0x775   : > { %1809 = vrot.lane.b32.xlu0 %v1309_v1, %s3139_s30 }
 0x776   : > { %1811 = vrot.lane.b32.xlu1 %v2882_v0, %s3139_s30 }
 0x779   : > { %1565 = vrot.lane.b32.xlu0 %v1395_v27, %s3145_s28 }
 0x77a   : > { %1817 = vrot.lane.b32.xlu1 %v1396_v24, %s3140_s23 }
 0x77d   : > { %1690 = vrot.lane.b32.xlu0 %v1395_v27, %s3141_s24 }
 0x781   : > { %1815 = vrot.lane.b32.xlu0 %v1395_v27, %s3140_s23 }
 0x7d3   : > { %v1417_v46 = vpop.permute.xlu0 %1416 }
 0x7d4   : > { %v1548_v47 = vpop.permute.xlu1 %1547  ;;  %v1447_v53 = vsel %vm1067_vm9, %v1445_v54, %v1417_v46 }
 0x7d5   : > { %v1573_v48 = vsel %vm1067_vm9, %v1571_v20, %v1548_v47  ;;  %v1449_v60 = vsel %vm1070_vm10, %v1447_v53, %v1425_v31 }
 0x7d6   : > { %v1575_v49 = vsel %vm1070_vm10, %v1573_v48, %v1554_v30  ;;  %v1451_v0 = vsel %vm739_vm7, %v1449_v60, %v1433_v12  ;;  %v1701_v30 = vsel %vm1070_vm10, %v1699_v19, %v1681_v34  ;;  %v3124_v19 = vld [vmem:[%s3260_s29 + $0x38] sm:$0xff] }
 0x7d7   : > { %v1550_v23 = vpop.permute.xlu0 %1549  ;;  %v1577_v21 = vsel %vm739_vm7, %v1575_v49, %v1560_v45  ;;  %v1703_v35 = vsel %vm739_vm7, %v1701_v30, %v1687_v10 }
 0x7d8   : > { %v1568_v26 = vpop.permute.xlu1 %1567  ;;  %v1574_v2 = vsel %vm1067_vm9, %v3445_v62, %v1550_v23 }
 0x7d9   : > { %v1576_v8 = vsel %vm1070_vm10, %v1574_v2, %v1556_v33  ;;  %v1702_v33 = vsel %vm739_vm7, %v1700_v28, %v1685_v44  ;;  %v1917_v2 = vld [vmem:[#allocation2 + $0x8] sm:$0xff]  ;;  %v2761_v28 = vld [vmem:[%s3741_s10] ss:$0 sm:$0xff] }
 0x7da   : > { %v1578_v62 = vsel %vm739_vm7, %v1576_v8, %v1562_v5  ;;  %v3118_v8 = vld [vmem:[%s3260_s29 + $0x8] sm:$0xff] }
 0x7db   : > { %v1415_v51 = vpop.permute.xlu0 %1414 }
 0x7dc   : > { %v1446_v55 = vsel %vm1067_vm9, %v1444_v50, %v1415_v51  ;;  %v1693_v52 = vpop.permute.xlu1 %1692 }
 0x7dd   : > { %v1448_v58 = vsel %vm1070_vm10, %v1446_v55, %v1423_v29  ;;  %v1580_v29 = vsel %vm1452_vm12, %v1578_v62, %v1568_v26  ;;  %v1705_v36 = vsel %vm1452_vm12, %v1703_v35, %v1693_v52  ;;  %v3123_v62 = vld [vmem:[%s3260_s29 + $0x30] sm:$0xff] }
 0x7de   : > { %v1450_v4 = vsel %vm739_vm7, %v1448_v58, %v1431_v16 }
 0x7df   : > { %v1804_v59 = vpop.permute.xlu0 %1803 }
 0x7e0   : > { %v1439_v61 = vpop.permute.xlu1 %1438  ;;  %v1823_v31 = vsel %vm1067_vm9, %v1821_v17, %v1804_v59 }
 0x7e1   : > { %v1453_v63 = vsel %vm1452_vm12, %v1450_v4, %v1439_v61  ;;  %v1825_v38 = vsel %vm1070_vm10, %v1823_v31, %v3405_v57  ;;  %v2726_v57 = vld [vmem:[%s3740_s9 + $0x8] sm:$0xff]  ;;  %v2762_v31 = vld [vmem:[%s3743_s12] ss:$0 sm:$0xff] }
 0x7e2   : > { %2896 = vmatprep.mubr.msk.f32.mxu1 %vm1455_vm11, %v1453_v63  ;;  %v1916_v63 = vld [vmem:[#allocation2] sm:$0xff] }
 0x7e3   : > { %v1441_v1 = vpop.permute.xlu0 %1440 }
 0x7e4   : > { %v1454_v3 = vsel %vm1452_vm12, %v1451_v0, %v1441_v1  ;;  %v1806_v7 = vpop.permute.xlu1 %1805  ;;  %v2175_v0 = vld [vmem:[#allocation2 + $0x50] sm:$0xff] }
 0x7e5   : > { %2897 = vmatmul.mubr.msk.f32.vlgmr.msra.gmra.mrb[6].mxu1 %vm1455_vm11, %v1454_v3  ;;  %v1824_v37 = vsel %vm1067_vm9, %v1822_v15, %v1806_v7  ;;  %v2176_v3 = vld [vmem:[#allocation2 + $0x58] sm:$0xff]  ;;  %v3117_v7 = vld [vmem:[%s3260_s29] sm:$0xff] }
 0x7e6   : > { %3009 = vmatpush3.bf16.msra.mxu1 %v3469_v14  ;;  %v1826_v40 = vsel %vm1070_vm10, %v1824_v37, %v3402_v56  ;;  %v2743_v56 = vld [vmem:[%s3740_s9 + $0x10] sm:$0xff] }
 0x7e7   : > { %v1810_v9 = vpop.permute.xlu0 %1809  ;;  %2912 = vmatprep.subr.mxu1 %v3487_v22 }
 0x7e8   : > { %v1812_v25 = vpop.permute.xlu1 %1811 }
 0x7e9   : > { %v1828_v42 = vsel %vm739_vm7, %v1826_v40, %v1812_v25 }
 0x7ea   : > { %2913 = vmatpush3.msra.mxu1 %v3487_v22 }
 0x7eb   : > { %v1566_v24 = vpop.permute.xlu0 %1565  ;;  %2954 = vmatprep.subr.mxu1 %v2743_v56 }
 0x7ec   : > { %v1579_v27 = vsel %vm1452_vm12, %v1577_v21, %v1566_v24  ;;  %v1818_v39 = vpop.permute.xlu1 %1817 }
 0x7ed   : > { %2905 = vmatprep.mubr.msk.f32.mxu0 %vm1455_vm11, %v1579_v27  ;;  %v1830_v5 = vsel %vm1452_vm12, %v1828_v42, %v1818_v39 }
 0x7ee   : > { %2906 = vmatmul.mubr.msk.f32.vlgmr.msra.gmra.mrb[8].mxu0 %vm1455_vm11, %v1580_v29 }
 0x7ef   : > { %v1691_v32 = vpop.permute.xlu0 %1690  ;;  %3013 = vmatpush3.bf16.msra.mxu0 %v3469_v14  ;;  %v1827_v14 = vsel %vm739_vm7, %v1825_v38, %v1810_v9  ;;  %v3119_v9 = vld [vmem:[%s3260_s29 + $0x10] sm:$0xff] }
 0x7f0   : > { %v1704_v34 = vsel %vm1452_vm12, %v1702_v33, %v1691_v32  ;;  %2921 = vmatprep.subr.mxu0 %v3487_v22 }
 0x7f1   : > { %2914 = vmatprep.mubr.msk.f32.mxu1 %vm1455_vm11, %v1704_v34 }
 0x7f2   : > { %2915 = vmatmul.mubr.msk.f32.vlgmr.msra.gmra.mrb[8].mxu1 %vm1455_vm11, %v1705_v36 }
 0x7f3   : > { %v1816_v41 = vpop.permute.xlu0 %1815  ;;  %2922 = vmatpush3.msra.mxu0 %v3487_v22  ;;  %v1924_v22 = vld [vmem:[%s3740_s9] sm:$0xff]  ;;  %2955 = vmatpush3.msra.mxu1 %v2743_v56 }
 0x7f4   : > { %v1829_v43 = vsel %vm1452_vm12, %v1827_v14, %v1816_v41  ;;  %2926 = vmatprep.subr.mxu0 %v2726_v57  ;;  %2968 = vmatprep.subr.msk.mxu1 %vm573_vm0, %v2316_v6 }
 0x7f5   : > { %2923 = vmatprep.mubr.msk.f32.mxu0 %vm1455_vm11, %v1829_v43 }
 0x7f6   : > { %2924 = vmatmul.mubr.msk.f32.vlgmr.msra.gmra.mrb[10].mxu0 %vm1455_vm11, %v1830_v5 }
 0x7f7   : > { %2927 = vmatpush3.msra.mxu0 %v2726_v57 }
 0x7f8   : > { %2940 = vmatprep.subr.mxu0 %v1924_v22 }
 0x8b8   : > { %v2898_v10 = vpop.f32.mrb[6].mxu1 }
 0x8b9   : > { %v1538_v12 = vmax.f32 %v2898_v10, 0.0  ;;  %v1528_v16 = vpop.f32.mrb[7].mxu1 }
 0x8ba   : > { %v1537_v44 = vmax.f32 %v1528_v16, 0.0 }
 0x8bb   : > { %1540 = vst.msk [vmem:[#allocation2 + $0x18] sm:$0xff] %vm1067_vm9, %v1538_v12 }
 0x8bc   : > { %1539 = vst.msk [vmem:[#allocation2 + $0x10] sm:$0xff] %vm1067_vm9, %v1537_v44 }
 0x8c1   : > { %v2907_v45 = vpop.f32.mrb[8].mxu0 }
 0x8c2   : > { %v1663_v46 = vmax.f32 %v2907_v45, 0.0  ;;  %v1653_v20 = vpop.f32.mrb[9].mxu0  ;;  %v1919_v49 = vld [vmem:[#allocation2 + $0x18] sm:$0xff] }
 0x8c3   : > { %v1662_v47 = vmax.f32 %v1653_v20, 0.0  ;;  %v1918_v48 = vld [vmem:[#allocation2 + $0x10] sm:$0xff] }
 0x8c4   : > { %1665 = vst.msk [vmem:[#allocation2 + $0x28] sm:$0xff] %vm1067_vm9, %v1663_v46  ;;  %2928 = vmatprep.mubr.msk.f32.mxu0 %vm1067_vm9, %v1918_v48 }
 0x8c5   : > { %1664 = vst.msk [vmem:[#allocation2 + $0x20] sm:$0xff] %vm1067_vm9, %v1662_v47  ;;  %v2916_v23 = vpop.f32.mrb[8].mxu1  ;;  %2929 = vmatmul.mubr.msk.f32.vlgmr.msra.gmra.mrb[12].mxu0 %vm1067_vm9, %v1919_v49 }
 0x8c6   : > { %v1788_v26 = vmax.f32 %v2916_v23, 0.0  ;;  %v1778_v50 = vpop.f32.mrb[9].mxu1  ;;  %2941 = vmatpush3.msra.mxu0 %v1924_v22 }
 0x8c7   : > { %v1787_v51 = vmax.f32 %v1778_v50, 0.0 }
 0x8c8   : > { %1790 = vst.msk [vmem:[#allocation2 + $0x38] sm:$0xff] %vm1067_vm9, %v1788_v26 }
 0x8c9   : > { %1789 = vst.msk [vmem:[#allocation2 + $0x30] sm:$0xff] %vm1067_vm9, %v1787_v51  ;;  %v2925_v54 = vpop.f32.mrb[10].mxu0 }
 0x8ca   : > { %v1913_v55 = vmax.f32 %v2925_v54, 0.0  ;;  %v1903_v52 = vpop.f32.mrb[11].mxu0 }
 0x8cb   : > { %v1912_v53 = vmax.f32 %v1903_v52, 0.0  ;;  %v1921_v59 = vld [vmem:[#allocation2 + $0x28] sm:$0xff] }
 0x8cc   : > { %1915 = vst.msk [vmem:[#allocation2 + $0x48] sm:$0xff] %vm1067_vm9, %v1913_v55  ;;  %v1920_v58 = vld [vmem:[#allocation2 + $0x20] sm:$0xff] }
 0x8cd   : > { %1914 = vst.msk [vmem:[#allocation2 + $0x40] sm:$0xff] %vm1067_vm9, %v1912_v53  ;;  %2931 = vmatprep.mubr.msk.f32.mxu0 %vm1067_vm9, %v1920_v58  ;;  %2956 = vmatprep.mubr.msk.f32.mxu1 %vm1067_vm9, %v1920_v58 }
 0x8ce   : > { %2932 = vmatmul.mubr.msk.f32.gmra.mrb[14].mxu0 %vm1067_vm9, %v1921_v59  ;;  %2957 = vmatmul.mubr.msk.f32.vlgmr.msra.gmra.mrb[10].mxu1 %vm1067_vm9, %v1921_v59 }
 0x8cf   : > { %2969 = vmatpush3.msk.msra.mxu1 %vm573_vm0, %v2316_v6  ;;  %v1923_v61 = vld [vmem:[#allocation2 + $0x38] sm:$0xff] }
 0x8d0   : > { %v1922_v60 = vld [vmem:[#allocation2 + $0x30] sm:$0xff] }
 0x8d1   : > { %2934 = vmatprep.mubr.msk.f32.mxu0 %vm1067_vm9, %v1922_v60  ;;  %2959 = vmatprep.mubr.msk.f32.mxu1 %vm1067_vm9, %v1922_v60 }
 0x8d2   : > { %2935 = vmatmul.mubr.msk.f32.gmra.mrb[16].mxu0 %vm1067_vm9, %v1923_v61  ;;  %2960 = vmatmul.mubr.msk.f32.gmra.mrb[12].mxu1 %vm1067_vm9, %v1923_v61 }
 0x8d3   : > { %v1926_v1 = vld [vmem:[#allocation2 + $0x48] sm:$0xff] }
 0x8d4   : > { %v1925_v4 = vld [vmem:[#allocation2 + $0x40] sm:$0xff] }
 0x8d5   : > { %2937 = vmatprep.mubr.msk.f32.mxu0 %vm1067_vm9, %v1925_v4  ;;  %2962 = vmatprep.mubr.msk.f32.mxu1 %vm1067_vm9, %v1925_v4 }
 0x8d6   : > { %2938 = vmatmul.mubr.msk.f32.gmra.mrb[18].mxu0 %vm1067_vm9, %v1926_v1  ;;  %2963 = vmatmul.mubr.msk.f32.gmra.mrb[14].mxu1 %vm1067_vm9, %v1926_v1 }
 0x8d7   : > { %2942 = vmatprep.mubr.msk.f32.mxu0 %vm1067_vm9, %v1916_v63  ;;  %2965 = vmatprep.mubr.msk.f32.mxu1 %vm1067_vm9, %v2175_v0 }
 0x8da   : > { %2943 = vmatmul.mubr.msk.f32.vlgmr.msra.gmra.mrb[12].mxu0 %vm1067_vm9, %v1917_v2  ;;  %2966 = vmatmul.mubr.msk.f32.gmra.mrb[16].mxu1 %vm1067_vm9, %v2176_v3 }
 0x8db   : > { %2945 = vmatprep.mubr.msk.f32.mxu0 %vm1067_vm9, %v1918_v48  ;;  %2970 = vmatprep.mubr.msk.f32.mxu1 %vm523_vm2, %v3117_v7 }
 0x8de   : > { %2946 = vmatmul.mubr.msk.f32.gmra.mrb[14].mxu0 %vm1067_vm9, %v1919_v49  ;;  %2971 = vmatmul.mubr.msk.f32.vlgmr.msra.gmra.mrb[10].mxu1 %vm523_vm2, %v3118_v8 }
 0x8df   : > { %2948 = vmatprep.mubr.msk.f32.mxu0 %vm1067_vm9, %v1920_v58  ;;  %2973 = vmatprep.mubr.msk.f32.mxu1 %vm523_vm2, %v3119_v9 }
 0x8e2   : > { %2949 = vmatmul.mubr.msk.f32.gmra.mrb[16].mxu0 %vm1067_vm9, %v1921_v59  ;;  %2974 = vmatmul.mubr.msk.f32.gmra.mrb[12].mxu1 %vm523_vm2, %v3120_v11 }
 0x8e3   : > { %2951 = vmatprep.mubr.msk.f32.mxu0 %vm1067_vm9, %v1922_v60  ;;  %2976 = vmatprep.mubr.msk.f32.mxu1 %vm523_vm2, %v3121_v13 }
 0x8e6   : > { %2952 = vmatmul.mubr.msk.f32.gmra.mrb[18].mxu0 %vm1067_vm9, %v1923_v61  ;;  %2977 = vmatmul.mubr.msk.f32.gmra.mrb[14].mxu1 %vm523_vm2, %v3122_v18 }
 0x8e7   : > { %2979 = vmatprep.mubr.msk.f32.mxu1 %vm523_vm2, %v3123_v62 }
 0x8ea   : > { %2980 = vmatmul.mubr.msk.f32.gmra.mrb[16].mxu1 %vm523_vm2, %v3124_v19 }
 0x9ad   : > { %v2944_v21 = vpop.f32.mrb[12].mxu0 }
 0x9ae   : > { %v2130_v24 = vpop.f32.mrb[13].mxu0 }
 0x9b1   : > { %v2947_v25 = vpop.f32.mrb[14].mxu0  ;;  %v2972_v27 = vpop.f32.mrb[10].mxu1 }
 0x9b2   : > { %v3014_v29 = vadd.f32 %v2972_v27, %v2944_v21  ;;  %v2140_v30 = vpop.f32.mrb[15].mxu0  ;;  %v2410_v17 = vpop.f32.mrb[11].mxu1 }
 0x9b3   : > { %v3015_v15 = vadd.f32 %v2410_v17, %v2130_v24 }
 0x9b4   : > { %v2465_v32 = vadd.f32 %v3014_v29, %v2761_v28 }
 0x9b5   : > { %v2464_v33 = vadd.f32 %v3015_v15, %v2761_v28  ;;  %v2950_v35 = vpop.f32.mrb[16].mxu0  ;;  %v2975_v37 = vpop.f32.mrb[12].mxu1 }
 0x9b6   : > { %v3016_v34 = vadd.f32 %v2975_v37, %v2947_v25  ;;  %v2150_v36 = vpop.f32.mrb[17].mxu0  ;;  %v2420_v38 = vpop.f32.mrb[13].mxu1  ;;  %v2480_v39 = vadd.f32 %v2762_v31, %v2465_v32 }
 0x9b7   : > { %v3017_v14 = vadd.f32 %v2420_v38, %v2140_v30  ;;  %v2479_v40 = vadd.f32 %v2762_v31, %v2464_v33 }
 0x9b8   : > { %v2467_v41 = vadd.f32 %v3016_v34, %v2761_v28  ;;  %v2488_v42 = vmax.f32 %v2480_v39, 0.0 }
 0x9b9   : > { %v2466_v43 = vadd.f32 %v3017_v14, %v2761_v28  ;;  %v2953_v5 = vpop.f32.mrb[18].mxu0  ;;  %v2978_v57 = vpop.f32.mrb[14].mxu1  ;;  %v2487_v56 = vmax.f32 %v2479_v40, 0.0 }
 0x9ba   : > { %v3018_v22 = vadd.f32 %v2978_v57, %v2950_v35  ;;  %v2160_v6 = vpop.f32.mrb[19].mxu0  ;;  %v2430_v10 = vpop.f32.mrb[15].mxu1  ;;  %v2498_v12 = vsel %vm1067_vm9, %v2488_v42, 0.0  ;;  %v2482_v16 = vadd.f32 %v2762_v31, %v2467_v41 }
 0x9bb   : > { %v3019_v44 = vadd.f32 %v2430_v10, %v2150_v36  ;;  %2499 = vadd.xlane.f32.xlu1 %v2498_v12  ;;  %v2495_v45 = vsel %vm1067_vm9, %v2487_v56, 0.0  ;;  %v2481_v46 = vadd.f32 %v2762_v31, %v2466_v43 }
 0x9bc   : > { %v2469_v20 = vadd.f32 %v3018_v22, %v2761_v28  ;;  %2496 = vadd.xlane.f32.xlu0 %v2495_v45  ;;  %v2490_v47 = vmax.f32 %v2482_v16, 0.0 }
 0x9bd   : > { %v2468_v48 = vadd.f32 %v3019_v44, %v2761_v28  ;;  %v2981_v49 = vpop.f32.mrb[16].mxu1  ;;  %v2489_v51 = vmax.f32 %v2481_v46, 0.0 }
 0x9be   : > { %v3020_v23 = vadd.f32 %v2981_v49, %v2953_v5  ;;  %v2440_v26 = vpop.f32.mrb[17].mxu1  ;;  %v2504_v50 = vsel %vm1067_vm9, %v2490_v47, 0.0  ;;  %v2484_v52 = vadd.f32 %v2762_v31, %v2469_v20 }
 0x9bf   : > { %v3021_v54 = vadd.f32 %v2440_v26, %v2160_v6  ;;  %v2483_v55 = vadd.f32 %v2762_v31, %v2468_v48  ;;  %v2501_v60 = vsel %vm1067_vm9, %v2489_v51, 0.0 }
 0x9c0   : > { %v2471_v53 = vadd.f32 %v3020_v23, %v2761_v28  ;;  %2505 = vadd.xlane.f32.xlu0 %v2504_v50  ;;  %v2492_v4 = vmax.f32 %v2484_v52, 0.0 }
 0x9c1   : > { %v2470_v58 = vadd.f32 %v3021_v54, %v2761_v28  ;;  %v2491_v59 = vmax.f32 %v2483_v55, 0.0 }
 0x9c2   : > { %v2486_v0 = vadd.f32 %v2762_v31, %v2471_v53  ;;  %v2510_v2 = vsel %vm1067_vm9, %v2492_v4, 0.0 }
 0x9c3   : > { %v2507_v61 = vsel %vm1067_vm9, %v2491_v59, 0.0  ;;  %v2485_v63 = vadd.f32 %v2762_v31, %v2470_v58 }
 0x9c4   : > { %2502 = vadd.xlane.f32.xlu0 %v2501_v60  ;;  %2508 = vadd.xlane.f32.xlu1 %v2507_v61  ;;  %v2494_v7 = vmax.f32 %v2486_v0, 0.0 }
 0x9c5   : > { %v2493_v1 = vmax.f32 %v2485_v63, 0.0  ;;  %v2763_v63 = vld [vmem:[%s3744_s13] ss:$0 sm:$0xff] }
 0x9c6   : > { %v2516_v8 = vsel %vm1067_vm9, %v2494_v7, 0.0 }
 0x9c7   : > { %v2513_v3 = vsel %vm1067_vm9, %v2493_v1, 0.0 }
 0x9c8   : > { %2511 = vadd.xlane.f32.xlu0 %v2510_v2  ;;  %2514 = vadd.xlane.f32.xlu1 %v2513_v3 }
 0x9cc   : > { %2517 = vadd.xlane.f32.xlu0 %v2516_v8 }
 0xa48   : > { %v2500_v9 = vpop.xlane.xlu1 %2499 }
 0xa49   : > { %v2521_v11 = vmul.f32 0.125, %v2500_v9  ;;  %v2497_v13 = vpop.xlane.xlu0 %2496 }
 0xa4a   : > { %v2520_v18 = vmul.f32 0.125, %v2497_v13 }
 0xa4b   : > { %v3651_v62 = vsub.f32 %v2488_v42, %v2521_v11 }
 0xa4c   : > { %v3653_v19 = vsub.f32 %v2487_v56, %v2520_v18 }
 0xa4d   : > { %v2506_v21 = vpop.xlane.xlu0 %2505  ;;  %v2537_v24 = vmul.f32 %v3651_v62, %v3651_v62 }
 0xa4e   : > { %v2523_v25 = vmul.f32 0.125, %v2506_v21  ;;  %v2536_v27 = vmul.f32 %v3653_v19, %v3653_v19 }
 0xa4f   : > { %v2547_v28 = vsel %vm1067_vm9, %v2537_v24, 0.0 }
 0xa50   : > { %v3660_v29 = vsub.f32 %v2490_v47, %v2523_v25  ;;  %2548 = vadd.xlane.f32.xlu0 %v2547_v28  ;;  %v2544_v30 = vsel %vm1067_vm9, %v2536_v27, 0.0 }
 0xa51   : > { %v2503_v17 = vpop.xlane.xlu0 %2502  ;;  %v2509_v15 = vpop.xlane.xlu1 %2508  ;;  %2545 = vadd.xlane.f32.xlu1 %v2544_v30 }
 0xa52   : > { %v2522_v31 = vmul.f32 0.125, %v2503_v17  ;;  %v2524_v32 = vmul.f32 0.125, %v2509_v15  ;;  %v2539_v33 = vmul.f32 %v3660_v29, %v3660_v29 }
 0xa54   : > { %v3665_v35 = vsub.f32 %v2489_v51, %v2522_v31  ;;  %v3667_v37 = vsub.f32 %v2491_v59, %v2524_v32  ;;  %v2553_v34 = vsel %vm1067_vm9, %v2539_v33, 0.0 }
 0xa55   : > { %v2512_v36 = vpop.xlane.xlu0 %2511  ;;  %2554 = vadd.xlane.f32.xlu0 %v2553_v34  ;;  %v2515_v38 = vpop.xlane.xlu1 %2514 }
 0xa56   : > { %v2525_v39 = vmul.f32 0.125, %v2512_v36  ;;  %v2526_v14 = vmul.f32 0.125, %v2515_v38  ;;  %v2538_v40 = vmul.f32 %v3665_v35, %v3665_v35  ;;  %v2540_v5 = vmul.f32 %v3667_v37, %v3667_v37 }
 0xa58   : > { %v3672_v41 = vsub.f32 %v2492_v4, %v2525_v39  ;;  %v3674_v42 = vsub.f32 %v2493_v1, %v2526_v14  ;;  %v2550_v43 = vsel %vm1067_vm9, %v2538_v40, 0.0  ;;  %v2556_v12 = vsel %vm1067_vm9, %v2540_v5, 0.0 }
 0xa59   : > { %v2518_v57 = vpop.xlane.xlu0 %2517  ;;  %2551 = vadd.xlane.f32.xlu1 %v2550_v43 }
 0xa5a   : > { %v2527_v56 = vmul.f32 0.125, %v2518_v57  ;;  %v2541_v22 = vmul.f32 %v3672_v41, %v3672_v41  ;;  %v2542_v16 = vmul.f32 %v3674_v42, %v3674_v42 }
 0xa5c   : > { %v3681_v6 = vsub.f32 %v2494_v7, %v2527_v56  ;;  %v2559_v10 = vsel %vm1067_vm9, %v2541_v22, 0.0  ;;  %v2562_v46 = vsel %vm1067_vm9, %v2542_v16, 0.0  ;;  %v2764_v7 = vld [vmem:[%s3745_s14] ss:$0 sm:$0xff] }
 0xa5d   : > { %2560 = vadd.xlane.f32.xlu0 %v2559_v10  ;;  %2557 = vadd.xlane.f32.xlu1 %v2556_v12 }
 0xa5e   : > { %v2543_v44 = vmul.f32 %v3681_v6, %v3681_v6 }
 0xa60   : > { %v2565_v45 = vsel %vm1067_vm9, %v2543_v44, 0.0 }
 0xa61   : > { %2566 = vadd.xlane.f32.xlu0 %v2565_v45  ;;  %2563 = vadd.xlane.f32.xlu1 %v2562_v46 }
 0xadd   : > { %v2549_v20 = vpop.xlane.xlu0 %2548 }
 0xade   : > { %v2569_v47 = vmul.f32 0.125, %v2549_v20  ;;  %v2546_v48 = vpop.xlane.xlu1 %2545 }
 0xadf   : > { %v2568_v49 = vmul.f32 0.125, %v2546_v48 }
 0xae0   : > { %v2577_v23 = vadd.f32 1e-05, %v2569_v47 }
 0xae1   : > { %v2576_v26 = vadd.f32 1e-05, %v2568_v49 }
 0xae2   : > { %3101 = vrsqrt.f32 %v2577_v23  ;;  %v2555_v50 = vpop.xlane.xlu0 %2554 }
 0xae3   : > { %3103 = vrsqrt.f32 %v2576_v26  ;;  %v2571_v51 = vmul.f32 0.125, %v2555_v50 }
 0xae5   : > { %v2579_v54 = vadd.f32 1e-05, %v2571_v51 }
 0xae6   : > { %v2552_v55 = vpop.xlane.xlu1 %2551 }
 0xae7   : > { %3105 = vrsqrt.f32 %v2579_v54  ;;  %v2570_v52 = vmul.f32 0.125, %v2552_v55 }
 0xae9   : > { %v2578_v53 = vadd.f32 1e-05, %v2570_v52 }
 0xaea   : > { %v2561_v58 = vpop.xlane.xlu0 %2560  ;;  %v2558_v59 = vpop.xlane.xlu1 %2557 }
 0xaeb   : > { %3107 = vrsqrt.f32 %v2578_v53  ;;  %v2573_v60 = vmul.f32 0.125, %v2561_v58  ;;  %v2572_v61 = vmul.f32 0.125, %v2558_v59 }
 0xaec   : > { %v3102_v4 = vpop.eup %3101 }
 0xaed   : > { %v3104_v0 = vpop.eup %3103  ;;  %v2593_v1 = vmul.f32 %v3102_v4, %v3651_v62  ;;  %v2581_v2 = vadd.f32 1e-05, %v2573_v60  ;;  %v2580_v3 = vadd.f32 1e-05, %v2572_v61 }
 0xaee   : > { %v2592_v8 = vmul.f32 %v3104_v0, %v3653_v19  ;;  %v2567_v9 = vpop.xlane.xlu0 %2566  ;;  %v2564_v11 = vpop.xlane.xlu1 %2563 }
 0xaef   : > { %v2608_v13 = vmul.f32 %v2763_v63, %v2593_v1  ;;  %3109 = vrsqrt.f32 %v2581_v2  ;;  %v2575_v18 = vmul.f32 0.125, %v2567_v9  ;;  %v2574_v21 = vmul.f32 0.125, %v2564_v11 }
 0xaf0   : > { %v2607_v62 = vmul.f32 %v2763_v63, %v2592_v8  ;;  %3111 = vrsqrt.f32 %v2580_v3 }
 0xaf1   : > { %v3106_v24 = vpop.eup %3105  ;;  %v2623_v25 = vadd.f32 %v2764_v7, %v2608_v13  ;;  %v2583_v19 = vadd.f32 1e-05, %v2575_v18  ;;  %v2582_v27 = vadd.f32 1e-05, %v2574_v21 }
 0xaf2   : > { %v2622_v28 = vadd.f32 %v2764_v7, %v2607_v62  ;;  %v2595_v30 = vmul.f32 %v3106_v24, %v3660_v29 }
 0xaf3   : > { %2631 = vst.msk [vmem:[%s3704_s20 + $0x8] sm:$0xff] %vm1067_vm9, %v2623_v25  ;;  %3113 = vrsqrt.f32 %v2583_v19 }
 0xaf4   : > { %2630 = vst.msk [vmem:[%s3704_s20] sm:$0xff] %vm1067_vm9, %v2622_v28  ;;  %v2610_v17 = vmul.f32 %v2763_v63, %v2595_v30  ;;  %3115 = vrsqrt.f32 %v2582_v27 }
 0xaf5   : > { %v3108_v15 = vpop.eup %3107 }
 0xaf6   : > { %v2625_v31 = vadd.f32 %v2764_v7, %v2610_v17  ;;  %v2594_v32 = vmul.f32 %v3108_v15, %v3665_v35 }
 0xaf8   : > { %2633 = vst.msk [vmem:[%s3704_s20 + $0x18] sm:$0xff] %vm1067_vm9, %v2625_v31  ;;  %v2609_v33 = vmul.f32 %v2763_v63, %v2594_v32 }
 0xaf9   : > { %v3110_v34 = vpop.eup %3109 }
 0xafa   : > { %v3112_v36 = vpop.eup %3111  ;;  %v2624_v29 = vadd.f32 %v2764_v7, %v2609_v33  ;;  %v2597_v38 = vmul.f32 %v3110_v34, %v3672_v41 }
 0xafb   : > { %v2596_v39 = vmul.f32 %v3112_v36, %v3667_v37 }
 0xafc   : > { %2632 = vst.msk [vmem:[%s3704_s20 + $0x10] sm:$0xff] %vm1067_vm9, %v2624_v29  ;;  %v2612_v14 = vmul.f32 %v2763_v63, %v2597_v38 }
 0xafd   : > { %v3114_v40 = vpop.eup %3113  ;;  %v2611_v43 = vmul.f32 %v2763_v63, %v2596_v39 }
 0xafe   : > { %v3116_v35 = vpop.eup %3115  ;;  %v2627_v5 = vadd.f32 %v2764_v7, %v2612_v14  ;;  %v2599_v57 = vmul.f32 %v3114_v40, %v3681_v6 }
 0xaff   : > { %v2626_v56 = vadd.f32 %v2764_v7, %v2611_v43  ;;  %v2598_v22 = vmul.f32 %v3116_v35, %v3674_v42 }
 0xb00   : > { %2635 = vst.msk [vmem:[%s3704_s20 + $0x28] sm:$0xff] %vm1067_vm9, %v2627_v5  ;;  %v2614_v10 = vmul.f32 %v2763_v63, %v2599_v57 }
 0xb01   : > { %2634 = vst.msk [vmem:[%s3704_s20 + $0x20] sm:$0xff] %vm1067_vm9, %v2626_v56  ;;  %v2613_v37 = vmul.f32 %v2763_v63, %v2598_v22 }
 0xb02   : > { %v2629_v41 = vadd.f32 %v2764_v7, %v2614_v10 }
 0xb03   : > { %v2628_v12 = vadd.f32 %v2764_v7, %v2613_v37 }
 0xb04   : > { %2637 = vst.msk [vmem:[%s3704_s20 + $0x38] sm:$0xff] %vm1067_vm9, %v2629_v41 }
 0xb05   : > { %2636 = vst.msk [vmem:[%s3704_s20 + $0x30] sm:$0xff] %vm1067_vm9, %v2628_v12 }
 0xb06 PF: > { %s25_s18 = sadd.s32 1, %s3131_s18  }
 0xb07   : > { %p22_p4 = scmp.ge.s32.totalorder %s25_s18, 4  }
 0xb09   :  { %24 = sbr.rel (!%p22_p4) target bundleno = 1 (0x1), region = 112 }

</bundles_post_ra>
